<compile_context>
chip_gen: v7x
topology: tpu7x:2x2x1
jax: 0.10.0
libtpu: 0.0.40
codegen_flags: <defaults>
</compile_context>

<pallas_src>
import functools
import math

import jax
import jax.numpy as jnp
from jax.experimental import pallas as pl
from jax.experimental.pallas import tpu as pltpu

LN_EPS = 1e-5  # PyTorch nn.LayerNorm default eps


def _noise_decomp_kernel(x_ref, lnw_ref, lnb_ref, opw_ref, opb_ref,
                         w1t_ref, b1_ref, w2t_ref, b2_ref, out_ref, acc_ref,
                         *, kernel_sizes):
    Bb, L, D = x_ref.shape
    M = len(kernel_sizes) + 1

    x = x_ref[...].astype(jnp.float32)                    # (Bb, L, D)
    first = x_ref[:, 0:1, :].astype(jnp.float32)          # (Bb, 1, D) replicate-pad row
    last = x_ref[:, L - 1:L, :].astype(jnp.float32)       # (Bb, 1, D)
    gamma = lnw_ref[...]                                  # (1, D)
    beta = lnb_ref[...]                                    # (1, D)

    def layer_norm(v):                                     # LN over d_model (last axis)
        mu = jnp.mean(v, axis=-1, keepdims=True)
        c = v - mu
        var = jnp.mean(c * c, axis=-1, keepdims=True)
        return c * jax.lax.rsqrt(var + LN_EPS) * gamma + beta

    def add_shifted(j):
        # acc[:, l, :] += x[:, clamp(l + j, 0, L - 1), :]   (replicate padding)
        if j >= L:
            acc_ref[...] = acc_ref[...] + last
        elif j <= -L:
            acc_ref[...] = acc_ref[...] + first
        elif j > 0:
            acc_ref[:, :L - j, :] = (acc_ref[:, :L - j, :]
                                     + x_ref[:, j:, :].astype(jnp.float32))
            acc_ref[:, L - j:, :] = acc_ref[:, L - j:, :] + last
        elif j < 0:
            jj = -j
            acc_ref[:, jj:, :] = (acc_ref[:, jj:, :]
                                  + x_ref[:, :L - jj, :].astype(jnp.float32))
            acc_ref[:, :jj, :] = acc_ref[:, :jj, :] + first

    # ---- branch 0: raw series; branches 1..: moving averages ----
    # The window sum is carried across kernel sizes (processed ascending) so
    # each extra kernel size only adds its new boundary shifts: O(max(k)*L*D).
    branches = [None] * M
    branches[0] = x
    acc_ref[...] = x                       # running window sum, window = [0, 0]
    cur_pf, cur_pe = 0, 0
    order = sorted(range(len(kernel_sizes)), key=lambda i: kernel_sizes[i])
    for idx in order:
        k = kernel_sizes[idx]
        pf = math.ceil((k - 1) / 2)        # front replicate padding
        pe = (k - 1) // 2                  # back replicate padding
        for j in range(cur_pe + 1, pe + 1):
            add_shifted(j)
        for j in range(cur_pf + 1, pf + 1):
            add_shifted(-j)
        cur_pf, cur_pe = pf, pe
        branches[idx + 1] = acc_ref[...] * (1.0 / k)   # restore original branch order

    # ---- LayerNorm over d_model of all branches at once: (M*Bb, L, D) ----
    y = jnp.concatenate(branches, axis=0)              # n = m * Bb + b
    normy = layer_norm(y)

    # ---- FullAttention (no mask), batched over all (branch, batch) pairs ----
    qs = normy * (1.0 / math.sqrt(D))   # fold scale into (N,L,D) operand, not (N,L,L) scores
    scores = jnp.einsum('nld,nsd->nls', qs, normy,
                        preferred_element_type=jnp.float32)   # f32: exp-sensitive path
    scores = scores - jnp.max(scores, axis=-1, keepdims=True)
    p = jnp.exp(scores)
    inv = pl.reciprocal(jnp.sum(p, axis=-1, keepdims=True), approx=True)
    attn = p * inv
    v = jnp.einsum('nls,nsd->nld', attn.astype(jnp.bfloat16),
                   normy.astype(jnp.bfloat16),
                   preferred_element_type=jnp.float32)        # (M*Bb, L, D)

    # ---- out_projection Linear(M, 1): per-branch scalar weights from SMEM ----
    y_proj = v[0:Bb] * opw_ref[0]
    for m in range(1, M):
        y_proj = y_proj + v[m * Bb:(m + 1) * Bb] * opw_ref[m]
    y_proj = y_proj + opb_ref[0]

    x2 = x - y_proj                     # de-noised series
    nx = layer_norm(x2)

    # ---- FFN: Linear(D,4D) -> ReLU -> Linear(4D,D), bf16 operands / f32 accumulate ----
    nx2 = nx.reshape(Bb * L, D)         # L % 8 == 0 keeps these reshapes layout-free
    h = jnp.dot(nx2.astype(jnp.bfloat16), w1t_ref[...],
                preferred_element_type=jnp.float32) + b1_ref[...]
    h = jnp.maximum(h, 0.0)
    new_x = jnp.dot(h.astype(jnp.bfloat16), w2t_ref[...],
                    preferred_element_type=jnp.float32) + b2_ref[...]

    out = x2.reshape(Bb * L, D) + new_x
    out_ref[...] = out.reshape(Bb, L, D).astype(out_ref.dtype)


def _pick_block_b(B, L, D, M, limit_bytes=4 * 1024 * 1024):
    """Largest divisor of B whose per-block live f32 footprint stays modest."""
    per_batch = 4 * (L * D * (3 * M + 10) + 2 * M * L * L)
    bb = max(1, min(B, limit_bytes // max(per_batch, 1)))
    while B % bb:
        bb -= 1
    return bb


def noise_decomp(x, params, kernel_sizes, block_b=None):
    """Returns (res, moving_mean), both equal, matching the PyTorch module."""
    B, L, D = x.shape
    M = len(kernel_sizes) + 1
    Dh = params["w1"].shape[0]

    if block_b is None:
        block_b = _pick_block_b(B, L, D, M)
    assert B % block_b == 0

    lnw = params["ln_w"].reshape(1, D).astype(jnp.float32)
    lnb = params["ln_b"].reshape(1, D).astype(jnp.float32)
    opw = params["op_w"].reshape(M).astype(jnp.float32)      # Linear(M,1) weight -> M scalars
    opb = params["op_b"].reshape(1).astype(jnp.float32)
    w1t = params["w1"].T.astype(jnp.bfloat16)                # (D, Dh) bf16 MXU operand
    b1 = params["b1"].reshape(1, Dh).astype(jnp.float32)
    w2t = params["w2"].T.astype(jnp.bfloat16)                # (Dh, D)
    b2 = params["b2"].reshape(1, D).astype(jnp.float32)

    max_k = max(kernel_sizes) if len(kernel_sizes) else 1
    flops = int(B * (4 * M * L * L * D              # QK^T + attn@V
                     + 4 * L * D * Dh               # FFN
                     + 2 * (max_k - 1) * L * D      # carried moving-average window sums
                     + 12 * (M + 2) * L * D))       # LayerNorms / projection / residual
    transcendentals = int(B * M * L * L + B * (M + 2) * L)
    bytes_accessed = int(8 * B * L * D + 4 * D * Dh + 8 * D + 4 * Dh + 4 * (M + 1))

    kernel = functools.partial(_noise_decomp_kernel,
                               kernel_sizes=tuple(int(k) for k in kernel_sizes))

    out = pl.pallas_call(
        kernel,
        out_shape=jax.ShapeDtypeStruct((B, L, D), x.dtype),
        grid=(B // block_b,),
        in_specs=[
            pl.BlockSpec((block_b, L, D), lambda b: (b, 0, 0)),   # x (block of batches)
            pl.BlockSpec((1, D), lambda b: (0, 0)),               # LN weight
            pl.BlockSpec((1, D), lambda b: (0, 0)),               # LN bias
            pl.BlockSpec(memory_space=pltpu.MemorySpace.SMEM),    # out_proj weight (M,)
            pl.BlockSpec(memory_space=pltpu.MemorySpace.SMEM),    # out_proj bias (1,)
            pl.BlockSpec((D, Dh), lambda b: (0, 0)),              # FFN dense1 weight^T (bf16)
            pl.BlockSpec((1, Dh), lambda b: (0, 0)),              # FFN dense1 bias
            pl.BlockSpec((Dh, D), lambda b: (0, 0)),              # FFN dense2 weight^T (bf16)
            pl.BlockSpec((1, D), lambda b: (0, 0)),               # FFN dense2 bias
        ],
        out_specs=pl.BlockSpec((block_b, L, D), lambda b: (b, 0, 0)),
        scratch_shapes=[pltpu.VMEM((block_b, L, D), jnp.float32)],  # moving-average window sum
        compiler_params=pltpu.CompilerParams(
            dimension_semantics=("parallel",),
            vmem_limit_bytes=32 * 1024 * 1024,
        ),
        cost_estimate=pl.CostEstimate(flops=flops,
                                      transcendentals=transcendentals,
                                      bytes_accessed=bytes_accessed),
    )(x, lnw, lnb, opw, opb, w1t, b1, w2t, b2)
    return out, out


def reference(x, params, kernel_sizes):
    """Pure-JAX f32 reference mirroring the PyTorch forward (eval mode)."""
    B, L, D = x.shape

    def mov_avg(v, k):
        pf = math.ceil((k - 1) / 2)
        pe = (k - 1) // 2
        front = jnp.repeat(v[:, :1, :], pf, axis=1)
        end = jnp.repeat(v[:, -1:, :], pe, axis=1)
        vp = jnp.concatenate([front, v, end], axis=1)
        return jnp.stack([vp[:, l:l + k, :].mean(axis=1) for l in range(L)], axis=1)

    y = x[:, :, None, :]
    for k in kernel_sizes:
        y = jnp.concatenate([y, mov_avg(x, k)[:, :, None, :]], axis=2)

    def ln(v):
        mu = v.mean(-1, keepdims=True)
        var = jnp.square(v - mu).mean(-1, keepdims=True)
        return (v - mu) / jnp.sqrt(var + LN_EPS) * params["ln_w"] + params["ln_b"]

    normy = ln(y)
    scale = 1.0 / math.sqrt(D)
    scores = jnp.einsum("blme,bsme->bmls", normy, normy) * scale
    attn = jax.nn.softmax(scores, axis=-1)
    V = jnp.einsum("bmls,bsmd->blmd", attn, normy)
    yp = jnp.einsum("blmd,m->bld", V, params["op_w"][0]) + params["op_b"][0]
    x2 = x - yp
    nx = ln(x2)
    h = jax.nn.relu(nx @ params["w1"].T + params["b1"])
    new_x = h @ params["w2"].T + params["b2"]
    out = x2 + new_x
    return out, out


if __name__ == "__main__":
    key = jax.random.PRNGKey(0)
    B, L, D = 2, 16, 32
    kernel_sizes = (3, 5)          # moving-average kernel sizes
    M = len(kernel_sizes) + 1
    Dh = 4 * D

    ks = jax.random.split(key, 7)

    def uniform(k, shape, fan_in):
        bound = 1.0 / math.sqrt(fan_in)
        return jax.random.uniform(k, shape, jnp.float32, -bound, bound)

    # Deterministic synthetic parameters (PyTorch-style init shapes).
    params = dict(
        ln_w=jnp.ones((D,), jnp.float32),
        ln_b=jnp.zeros((D,), jnp.float32),
        op_w=uniform(ks[0], (1, M), M),     # out_projection: Linear(M, 1)
        op_b=uniform(ks[1], (1,), M),
        w1=uniform(ks[2], (Dh, D), D),      # FFN dense1: Linear(D, 4D)
        b1=uniform(ks[3], (Dh,), D),
        w2=uniform(ks[4], (D, Dh), Dh),     # FFN dense2: Linear(4D, D)
        b2=uniform(ks[5], (D,), Dh),
    )
    x = jax.random.normal(ks[6], (B, L, D), jnp.float32)

    res, moving_mean = noise_decomp(x, params, kernel_sizes)
    jax.block_until_ready(res)

    ref, _ = reference(x, params, kernel_sizes)
    err = float(jnp.max(jnp.abs(res - ref)))
    # Tolerance accounts for bf16 MXU operands (attn@V, FFN) with f32 accumulation.
    assert jnp.allclose(res, ref, rtol=1e-2, atol=2e-2), f"max abs err {err}"
    # TODO(synk): self.BN (BatchNorm1d) and the dropout layers are defined but unused /
    # identity in the reference eval-mode forward, so they are intentionally omitted.

    print("KERNEL_OK")
</pallas_src>

<mosaic_0001>
module attributes {stable_mosaic.version = 11 : i64} {
  func.func @_noise_decomp_kernel(%arg0: i32, %arg1: memref<2x16x32xf32, #tpu.memory_space<vmem>>, %arg2: memref<1x32xf32, #tpu.memory_space<vmem>>, %arg3: memref<1x32xf32, #tpu.memory_space<vmem>>, %arg4: memref<3xf32, #tpu.memory_space<smem>>, %arg5: memref<1xf32, #tpu.memory_space<smem>>, %arg6: memref<32x128xbf16, #tpu.memory_space<vmem>>, %arg7: memref<1x128xf32, #tpu.memory_space<vmem>>, %arg8: memref<128x32xbf16, #tpu.memory_space<vmem>>, %arg9: memref<1x32xf32, #tpu.memory_space<vmem>>, %arg10: memref<2x16x32xf32, #tpu.memory_space<vmem>>, %arg11: memref<2x16x32xf32, #tpu.memory_space<vmem>>) attributes {dimension_semantics = [#tpu.dimension_semantics<parallel>], iteration_bounds = array<i64: 1>, scalar_prefetch = 0 : i64, scratch_operands = 1 : i64, tpu.core_type = #tpu.core_type<tc>, window_params = [{transform_indices = @transform_0, window_bounds = array<i64: 2, 16, 32>}, {pipeline_mode = #tpu.pipeline_mode<synchronous>, transform_indices = @transform_1, window_bounds = array<i64: 1, 32>}, {pipeline_mode = #tpu.pipeline_mode<synchronous>, transform_indices = @transform_2, window_bounds = array<i64: 1, 32>}, {transform_indices = @transform_3, window_bounds = array<i64: 3>}, {transform_indices = @transform_4, window_bounds = array<i64: 1>}, {pipeline_mode = #tpu.pipeline_mode<synchronous>, transform_indices = @transform_5, window_bounds = array<i64: 32, 128>}, {pipeline_mode = #tpu.pipeline_mode<synchronous>, transform_indices = @transform_6, window_bounds = array<i64: 1, 128>}, {pipeline_mode = #tpu.pipeline_mode<synchronous>, transform_indices = @transform_7, window_bounds = array<i64: 128, 32>}, {pipeline_mode = #tpu.pipeline_mode<synchronous>, transform_indices = @transform_8, window_bounds = array<i64: 1, 32>}, {transform_indices = @transform_9, window_bounds = array<i64: 2, 16, 32>}]} {
    %c0 = arith.constant 0 : index
    %c0_0 = arith.constant 0 : index
    %c0_1 = arith.constant 0 : index
    %0 = vector.load %arg1[%c0, %c0_0, %c0_1] : memref<2x16x32xf32, #tpu.memory_space<vmem>>, vector<2x16x32xf32>
    %c0_2 = arith.constant 0 : index
    %c0_3 = arith.constant 0 : index
    %c0_4 = arith.constant 0 : index
    %1 = vector.load %arg1[%c0_2, %c0_3, %c0_4] : memref<2x16x32xf32, #tpu.memory_space<vmem>>, vector<2x1x32xf32>
    %c0_5 = arith.constant 0 : index
    %c15 = arith.constant 15 : index
    %c0_6 = arith.constant 0 : index
    %2 = vector.load %arg1[%c0_5, %c15, %c0_6] : memref<2x16x32xf32, #tpu.memory_space<vmem>>, vector<2x1x32xf32>
    %c0_7 = arith.constant 0 : index
    %c0_8 = arith.constant 0 : index
    %3 = vector.load %arg2[%c0_7, %c0_8] : memref<1x32xf32, #tpu.memory_space<vmem>>, vector<1x32xf32>
    %c0_9 = arith.constant 0 : index
    %c0_10 = arith.constant 0 : index
    %4 = vector.load %arg3[%c0_9, %c0_10] : memref<1x32xf32, #tpu.memory_space<vmem>>, vector<1x32xf32>
    %c0_11 = arith.constant 0 : index
    %c0_12 = arith.constant 0 : index
    %c0_13 = arith.constant 0 : index
    %5 = vector.load %arg11[%c0_11, %c0_12, %c0_13] : memref<2x16x32xf32, #tpu.memory_space<vmem>>, vector<2x16x32xf32>
    tpu.vector_store %arg11[%c0_11, %c0_12, %c0_13], %0 {strides = array<i32>} : memref<2x16x32xf32, #tpu.memory_space<vmem>>, vector<2x16x32xf32>,
    %c0_14 = arith.constant 0 : index
    %c0_15 = arith.constant 0 : index
    %c0_16 = arith.constant 0 : index
    %6 = vector.load %arg11[%c0_14, %c0_15, %c0_16] : memref<2x16x32xf32, #tpu.memory_space<vmem>>, vector<2x15x32xf32>
    %c0_17 = arith.constant 0 : index
    %c1 = arith.constant 1 : index
    %c0_18 = arith.constant 0 : index
    %7 = vector.load %arg1[%c0_17, %c1, %c0_18] : memref<2x16x32xf32, #tpu.memory_space<vmem>>, vector<2x15x32xf32>
    %8 = arith.addf %6, %7 : vector<2x15x32xf32>
    %c0_19 = arith.constant 0 : index
    %c0_20 = arith.constant 0 : index
    %c0_21 = arith.constant 0 : index
    %9 = vector.load %arg11[%c0_19, %c0_20, %c0_21] : memref<2x16x32xf32, #tpu.memory_space<vmem>>, vector<2x15x32xf32>
    tpu.vector_store %arg11[%c0_19, %c0_20, %c0_21], %8 {strides = array<i32>} : memref<2x16x32xf32, #tpu.memory_space<vmem>>, vector<2x15x32xf32>,
    %c0_22 = arith.constant 0 : index
    %c15_23 = arith.constant 15 : index
    %c0_24 = arith.constant 0 : index
    %10 = vector.load %arg11[%c0_22, %c15_23, %c0_24] : memref<2x16x32xf32, #tpu.memory_space<vmem>>, vector<2x1x32xf32>
    %11 = arith.addf %10, %2 : vector<2x1x32xf32>
    %c0_25 = arith.constant 0 : index
    %c15_26 = arith.constant 15 : index
    %c0_27 = arith.constant 0 : index
    %12 = vector.load %arg11[%c0_25, %c15_26, %c0_27] : memref<2x16x32xf32, #tpu.memory_space<vmem>>, vector<2x1x32xf32>
    tpu.vector_store %arg11[%c0_25, %c15_26, %c0_27], %11 {strides = array<i32>} : memref<2x16x32xf32, #tpu.memory_space<vmem>>, vector<2x1x32xf32>,
    %c0_28 = arith.constant 0 : index
    %c1_29 = arith.constant 1 : index
    %c0_30 = arith.constant 0 : index
    %13 = vector.load %arg11[%c0_28, %c1_29, %c0_30] : memref<2x16x32xf32, #tpu.memory_space<vmem>>, vector<2x15x32xf32>
    %c0_31 = arith.constant 0 : index
    %c0_32 = arith.constant 0 : index
    %c0_33 = arith.constant 0 : index
    %14 = vector.load %arg1[%c0_31, %c0_32, %c0_33] : memref<2x16x32xf32, #tpu.memory_space<vmem>>, vector<2x15x32xf32>
    %15 = arith.addf %13, %14 : vector<2x15x32xf32>
    %c0_34 = arith.constant 0 : index
    %c1_35 = arith.constant 1 : index
    %c0_36 = arith.constant 0 : index
    %16 = vector.load %arg11[%c0_34, %c1_35, %c0_36] : memref<2x16x32xf32, #tpu.memory_space<vmem>>, vector<2x15x32xf32>
    tpu.vector_store %arg11[%c0_34, %c1_35, %c0_36], %15 {strides = array<i32>} : memref<2x16x32xf32, #tpu.memory_space<vmem>>, vector<2x15x32xf32>,
    %c0_37 = arith.constant 0 : index
    %c0_38 = arith.constant 0 : index
    %c0_39 = arith.constant 0 : index
    %17 = vector.load %arg11[%c0_37, %c0_38, %c0_39] : memref<2x16x32xf32, #tpu.memory_space<vmem>>, vector<2x1x32xf32>
    %18 = arith.addf %17, %1 : vector<2x1x32xf32>
    %c0_40 = arith.constant 0 : index
    %c0_41 = arith.constant 0 : index
    %c0_42 = arith.constant 0 : index
    %19 = vector.load %arg11[%c0_40, %c0_41, %c0_42] : memref<2x16x32xf32, #tpu.memory_space<vmem>>, vector<2x1x32xf32>
    tpu.vector_store %arg11[%c0_40, %c0_41, %c0_42], %18 {strides = array<i32>} : memref<2x16x32xf32, #tpu.memory_space<vmem>>, vector<2x1x32xf32>,
    %c0_43 = arith.constant 0 : index
    %c0_44 = arith.constant 0 : index
    %c0_45 = arith.constant 0 : index
    %20 = vector.load %arg11[%c0_43, %c0_44, %c0_45] : memref<2x16x32xf32, #tpu.memory_space<vmem>>, vector<2x16x32xf32>
    %cst = arith.constant 0.333333343 : f32
    %21 = vector.broadcast %cst : f32 to vector<2x16x32xf32>
    %22 = arith.mulf %20, %21 : vector<2x16x32xf32>
    %c0_46 = arith.constant 0 : index
    %c0_47 = arith.constant 0 : index
    %c0_48 = arith.constant 0 : index
    %23 = vector.load %arg11[%c0_46, %c0_47, %c0_48] : memref<2x16x32xf32, #tpu.memory_space<vmem>>, vector<2x14x32xf32>
    %c0_49 = arith.constant 0 : index
    %c2 = arith.constant 2 : index
    %c0_50 = arith.constant 0 : index
    %24 = vector.load %arg1[%c0_49, %c2, %c0_50] : memref<2x16x32xf32, #tpu.memory_space<vmem>>, vector<2x14x32xf32>
    %25 = arith.addf %23, %24 : vector<2x14x32xf32>
    %c0_51 = arith.constant 0 : index
    %c0_52 = arith.constant 0 : index
    %c0_53 = arith.constant 0 : index
    %26 = vector.load %arg11[%c0_51, %c0_52, %c0_53] : memref<2x16x32xf32, #tpu.memory_space<vmem>>, vector<2x14x32xf32>
    tpu.vector_store %arg11[%c0_51, %c0_52, %c0_53], %25 {strides = array<i32>} : memref<2x16x32xf32, #tpu.memory_space<vmem>>, vector<2x14x32xf32>,
    %c0_54 = arith.constant 0 : index
    %c14 = arith.constant 14 : index
    %c0_55 = arith.constant 0 : index
    %27 = vector.load %arg11[%c0_54, %c14, %c0_55] : memref<2x16x32xf32, #tpu.memory_space<vmem>>, vector<2x2x32xf32>
    %28 = vector.broadcast %2 : vector<2x1x32xf32> to vector<2x2x32xf32>
    %29 = arith.addf %27, %28 : vector<2x2x32xf32>
    %c0_56 = arith.constant 0 : index
    %c14_57 = arith.constant 14 : index
    %c0_58 = arith.constant 0 : index
    %30 = vector.load %arg11[%c0_56, %c14_57, %c0_58] : memref<2x16x32xf32, #tpu.memory_space<vmem>>, vector<2x2x32xf32>
    tpu.vector_store %arg11[%c0_56, %c14_57, %c0_58], %29 {strides = array<i32>} : memref<2x16x32xf32, #tpu.memory_space<vmem>>, vector<2x2x32xf32>,
    %c0_59 = arith.constant 0 : index
    %c2_60 = arith.constant 2 : index
    %c0_61 = arith.constant 0 : index
    %31 = vector.load %arg11[%c0_59, %c2_60, %c0_61] : memref<2x16x32xf32, #tpu.memory_space<vmem>>, vector<2x14x32xf32>
    %c0_62 = arith.constant 0 : index
    %c0_63 = arith.constant 0 : index
    %c0_64 = arith.constant 0 : index
    %32 = vector.load %arg1[%c0_62, %c0_63, %c0_64] : memref<2x16x32xf32, #tpu.memory_space<vmem>>, vector<2x14x32xf32>
    %33 = arith.addf %31, %32 : vector<2x14x32xf32>
    %c0_65 = arith.constant 0 : index
    %c2_66 = arith.constant 2 : index
    %c0_67 = arith.constant 0 : index
    %34 = vector.load %arg11[%c0_65, %c2_66, %c0_67] : memref<2x16x32xf32, #tpu.memory_space<vmem>>, vector<2x14x32xf32>
    tpu.vector_store %arg11[%c0_65, %c2_66, %c0_67], %33 {strides = array<i32>} : memref<2x16x32xf32, #tpu.memory_space<vmem>>, vector<2x14x32xf32>,
    %c0_68 = arith.constant 0 : index
    %c0_69 = arith.constant 0 : index
    %c0_70 = arith.constant 0 : index
    %35 = vector.load %arg11[%c0_68, %c0_69, %c0_70] : memref<2x16x32xf32, #tpu.memory_space<vmem>>, vector<2x2x32xf32>
    %36 = vector.broadcast %1 : vector<2x1x32xf32> to vector<2x2x32xf32>
    %37 = arith.addf %35, %36 : vector<2x2x32xf32>
    %c0_71 = arith.constant 0 : index
    %c0_72 = arith.constant 0 : index
    %c0_73 = arith.constant 0 : index
    %38 = vector.load %arg11[%c0_71, %c0_72, %c0_73] : memref<2x16x32xf32, #tpu.memory_space<vmem>>, vector<2x2x32xf32>
    tpu.vector_store %arg11[%c0_71, %c0_72, %c0_73], %37 {strides = array<i32>} : memref<2x16x32xf32, #tpu.memory_space<vmem>>, vector<2x2x32xf32>,
    %c0_74 = arith.constant 0 : index
    %c0_75 = arith.constant 0 : index
    %c0_76 = arith.constant 0 : index
    %39 = vector.load %arg11[%c0_74, %c0_75, %c0_76] : memref<2x16x32xf32, #tpu.memory_space<vmem>>, vector<2x16x32xf32>
    %cst_77 = arith.constant 2.000000e-01 : f32
    %40 = vector.broadcast %cst_77 : f32 to vector<2x16x32xf32>
    %41 = arith.mulf %39, %40 : vector<2x16x32xf32>
    %42 = tpu.concatenate %0, %22, %41 in 0 : vector<2x16x32xf32>, vector<2x16x32xf32>, vector<2x16x32xf32> -> vector<6x16x32xf32>
    %cst_78 = arith.constant dense<0.000000e+00> : vector<6x16xf32>
    %43 = vector.multi_reduction <add>, %42, %cst_78 [2] : vector<6x16x32xf32> to vector<6x16xf32>
    %44 = vector.shape_cast %43 : vector<6x16xf32> to vector<6x16x1xf32>
    %cst_79 = arith.constant 3.200000e+01 : f32
    %45 = vector.broadcast %cst_79 : f32 to vector<6x16x1xf32>
    %46 = arith.divf %44, %45 : vector<6x16x1xf32>
    %47 = vector.broadcast %46 : vector<6x16x1xf32> to vector<6x16x32xf32>
    %48 = arith.subf %42, %47 : vector<6x16x32xf32>
    %49 = arith.mulf %48, %48 : vector<6x16x32xf32>
    %cst_80 = arith.constant dense<0.000000e+00> : vector<6x16xf32>
    %50 = vector.multi_reduction <add>, %49, %cst_80 [2] : vector<6x16x32xf32> to vector<6x16xf32>
    %51 = vector.shape_cast %50 : vector<6x16xf32> to vector<6x16x1xf32>
    %cst_81 = arith.constant 3.200000e+01 : f32
    %52 = vector.broadcast %cst_81 : f32 to vector<6x16x1xf32>
    %53 = arith.divf %51, %52 : vector<6x16x1xf32>
    %cst_82 = arith.constant 9.99999974E-6 : f32
    %54 = vector.broadcast %cst_82 : f32 to vector<6x16x1xf32>
    %55 = arith.addf %53, %54 : vector<6x16x1xf32>
    %56 = math.rsqrt %55 : vector<6x16x1xf32>
    %57 = vector.broadcast %56 : vector<6x16x1xf32> to vector<6x16x32xf32>
    %58 = arith.mulf %48, %57 : vector<6x16x32xf32>
    %59 = vector.shape_cast %3 : vector<1x32xf32> to vector<1x1x32xf32>
    %60 = vector.broadcast %59 : vector<1x1x32xf32> to vector<6x16x32xf32>
    %61 = arith.mulf %58, %60 : vector<6x16x32xf32>
    %62 = vector.shape_cast %4 : vector<1x32xf32> to vector<1x1x32xf32>
    %63 = vector.broadcast %62 : vector<1x1x32xf32> to vector<6x16x32xf32>
    %64 = arith.addf %61, %63 : vector<6x16x32xf32>
    %cst_83 = arith.constant 0.176776692 : f32
    %65 = vector.broadcast %cst_83 : f32 to vector<6x16x32xf32>
    %66 = arith.mulf %64, %65 : vector<6x16x32xf32>
    "tpu.trace_start"() <{level = 10 : i32, message = "nld,nsd->nls"}> : () -> ()
    %cst_84 = arith.constant dense<0.000000e+00> : vector<6x16x16xf32>
    %67 = tpu.matmul %66, %64, %cst_84 {dimension_numbers = #tpu.dot_dimension_numbers<[2], [2], [1], [1], [0, 0, 0, 1, 1, 1], [0], [0]>} : vector<6x16x32xf32>, vector<6x16x32xf32>, vector<6x16x16xf32> -> vector<6x16x16xf32>
    "tpu.trace_stop"() : () -> ()
    %cst_85 = arith.constant dense<0xFF800000> : vector<6x16xf32>
    %68 = vector.multi_reduction <maximumf>, %67, %cst_85 [2] : vector<6x16x16xf32> to vector<6x16xf32>
    %69 = vector.shape_cast %68 : vector<6x16xf32> to vector<6x16x1xf32>
    %70 = vector.broadcast %69 : vector<6x16x1xf32> to vector<6x16x16xf32>
    %71 = arith.subf %67, %70 : vector<6x16x16xf32>
    %72 = math.exp %71 : vector<6x16x16xf32>
    %cst_86 = arith.constant dense<0.000000e+00> : vector<6x16xf32>
    %73 = vector.multi_reduction <add>, %72, %cst_86 [2] : vector<6x16x16xf32> to vector<6x16xf32>
    %74 = vector.shape_cast %73 : vector<6x16xf32> to vector<6x16x1xf32>
    %75 = tpu.reciprocal %74 {approx = true} : vector<6x16x1xf32> -> vector<6x16x1xf32>
    %76 = vector.broadcast %75 : vector<6x16x1xf32> to vector<6x16x16xf32>
    %77 = arith.mulf %72, %76 : vector<6x16x16xf32>
    %78 = arith.truncf %77 : vector<6x16x16xf32> to vector<6x16x16xbf16>
    %79 = arith.truncf %64 : vector<6x16x32xf32> to vector<6x16x32xbf16>
    "tpu.trace_start"() <{level = 10 : i32, message = "nls,nsd->nld"}> : () -> ()
    %cst_87 = arith.constant dense<0.000000e+00> : vector<6x16x32xf32>
    %80 = tpu.matmul %78, %79, %cst_87 {dimension_numbers = #tpu.dot_dimension_numbers<[2], [1], [1], [2], [0, 0, 0, 1, 1, 2], [0], [0]>} : vector<6x16x16xbf16>, vector<6x16x32xbf16>, vector<6x16x32xf32> -> vector<6x16x32xf32>
    "tpu.trace_stop"() : () -> ()
    %81 = vector.extract_strided_slice %80 {offsets = [0, 0, 0], sizes = [2, 16, 32], strides = [1, 1, 1]} : vector<6x16x32xf32> to vector<2x16x32xf32>
    %c0_88 = arith.constant 0 : index
    %82 = memref.load %arg4[%c0_88] : memref<3xf32, #tpu.memory_space<smem>>
    %83 = vector.broadcast %82 : f32 to vector<2x16x32xf32>
    %84 = arith.mulf %81, %83 : vector<2x16x32xf32>
    %85 = vector.extract_strided_slice %80 {offsets = [2, 0, 0], sizes = [2, 16, 32], strides = [1, 1, 1]} : vector<6x16x32xf32> to vector<2x16x32xf32>
    %c1_89 = arith.constant 1 : index
    %86 = memref.load %arg4[%c1_89] : memref<3xf32, #tpu.memory_space<smem>>
    %87 = vector.broadcast %86 : f32 to vector<2x16x32xf32>
    %88 = arith.mulf %85, %87 : vector<2x16x32xf32>
    %89 = arith.addf %84, %88 : vector<2x16x32xf32>
    %90 = vector.extract_strided_slice %80 {offsets = [4, 0, 0], sizes = [2, 16, 32], strides = [1, 1, 1]} : vector<6x16x32xf32> to vector<2x16x32xf32>
    %c2_90 = arith.constant 2 : index
    %91 = memref.load %arg4[%c2_90] : memref<3xf32, #tpu.memory_space<smem>>
    %92 = vector.broadcast %91 : f32 to vector<2x16x32xf32>
    %93 = arith.mulf %90, %92 : vector<2x16x32xf32>
    %94 = arith.addf %89, %93 : vector<2x16x32xf32>
    %c0_91 = arith.constant 0 : index
    %95 = memref.load %arg5[%c0_91] : memref<1xf32, #tpu.memory_space<smem>>
    %96 = vector.broadcast %95 : f32 to vector<2x16x32xf32>
    %97 = arith.addf %94, %96 : vector<2x16x32xf32>
    %98 = arith.subf %0, %97 : vector<2x16x32xf32>
    %cst_92 = arith.constant dense<0.000000e+00> : vector<2x16xf32>
    %99 = vector.multi_reduction <add>, %98, %cst_92 [2] : vector<2x16x32xf32> to vector<2x16xf32>
    %100 = vector.shape_cast %99 : vector<2x16xf32> to vector<2x16x1xf32>
    %cst_93 = arith.constant 3.200000e+01 : f32
    %101 = vector.broadcast %cst_93 : f32 to vector<2x16x1xf32>
    %102 = arith.divf %100, %101 : vector<2x16x1xf32>
    %103 = vector.broadcast %102 : vector<2x16x1xf32> to vector<2x16x32xf32>
    %104 = arith.subf %98, %103 : vector<2x16x32xf32>
    %105 = arith.mulf %104, %104 : vector<2x16x32xf32>
    %cst_94 = arith.constant dense<0.000000e+00> : vector<2x16xf32>
    %106 = vector.multi_reduction <add>, %105, %cst_94 [2] : vector<2x16x32xf32> to vector<2x16xf32>
    %107 = vector.shape_cast %106 : vector<2x16xf32> to vector<2x16x1xf32>
    %cst_95 = arith.constant 3.200000e+01 : f32
    %108 = vector.broadcast %cst_95 : f32 to vector<2x16x1xf32>
    %109 = arith.divf %107, %108 : vector<2x16x1xf32>
    %cst_96 = arith.constant 9.99999974E-6 : f32
    %110 = vector.broadcast %cst_96 : f32 to vector<2x16x1xf32>
    %111 = arith.addf %109, %110 : vector<2x16x1xf32>
    %112 = math.rsqrt %111 : vector<2x16x1xf32>
    %113 = vector.broadcast %112 : vector<2x16x1xf32> to vector<2x16x32xf32>
    %114 = arith.mulf %104, %113 : vector<2x16x32xf32>
    %115 = vector.shape_cast %3 : vector<1x32xf32> to vector<1x1x32xf32>
    %116 = vector.broadcast %115 : vector<1x1x32xf32> to vector<2x16x32xf32>
    %117 = arith.mulf %114, %116 : vector<2x16x32xf32>
    %118 = vector.shape_cast %4 : vector<1x32xf32> to vector<1x1x32xf32>
    %119 = vector.broadcast %118 : vector<1x1x32xf32> to vector<2x16x32xf32>
    %120 = arith.addf %117, %119 : vector<2x16x32xf32>
    %121 = vector.shape_cast %120 : vector<2x16x32xf32> to vector<32x32xf32>
    %122 = arith.truncf %121 : vector<32x32xf32> to vector<32x32xbf16>
    %c0_97 = arith.constant 0 : index
    %c0_98 = arith.constant 0 : index
    %123 = vector.load %arg6[%c0_97, %c0_98] : memref<32x128xbf16, #tpu.memory_space<vmem>>, vector<32x128xbf16>
    %cst_99 = arith.constant dense<0.000000e+00> : vector<32x128xf32>
    %124 = tpu.matmul %122, %123, %cst_99 {dimension_numbers = #tpu.dot_dimension_numbers<[1], [0], [0], [1], [0, 0, 1, 1], [], []>} : vector<32x32xbf16>, vector<32x128xbf16>, vector<32x128xf32> -> vector<32x128xf32>
    %c0_100 = arith.constant 0 : index
    %c0_101 = arith.constant 0 : index
    %125 = vector.load %arg7[%c0_100, %c0_101] : memref<1x128xf32, #tpu.memory_space<vmem>>, vector<1x128xf32>
    %126 = vector.broadcast %125 : vector<1x128xf32> to vector<32x128xf32>
    %127 = arith.addf %124, %126 : vector<32x128xf32>
    %cst_102 = arith.constant 0.000000e+00 : f32
    %128 = vector.broadcast %cst_102 : f32 to vector<32x128xf32>
    %129 = arith.maximumf %127, %128 : vector<32x128xf32>
    %130 = arith.truncf %129 : vector<32x128xf32> to vector<32x128xbf16>
    %c0_103 = arith.constant 0 : index
    %c0_104 = arith.constant 0 : index
    %131 = vector.load %arg8[%c0_103, %c0_104] : memref<128x32xbf16, #tpu.memory_space<vmem>>, vector<128x32xbf16>
    %cst_105 = arith.constant dense<0.000000e+00> : vector<32x32xf32>
    %132 = tpu.matmul %130, %131, %cst_105 {dimension_numbers = #tpu.dot_dimension_numbers<[1], [0], [0], [1], [0, 0, 1, 1], [], []>} : vector<32x128xbf16>, vector<128x32xbf16>, vector<32x32xf32> -> vector<32x32xf32>
    %c0_106 = arith.constant 0 : index
    %c0_107 = arith.constant 0 : index
    %133 = vector.load %arg9[%c0_106, %c0_107] : memref<1x32xf32, #tpu.memory_space<vmem>>, vector<1x32xf32>
    %134 = vector.broadcast %133 : vector<1x32xf32> to vector<32x32xf32>
    %135 = arith.addf %132, %134 : vector<32x32xf32>
    %136 = vector.shape_cast %98 : vector<2x16x32xf32> to vector<32x32xf32>
    %137 = arith.addf %136, %135 : vector<32x32xf32>
    %138 = vector.shape_cast %137 : vector<32x32xf32> to vector<2x16x32xf32>
    %c0_108 = arith.constant 0 : index
    %c0_109 = arith.constant 0 : index
    %c0_110 = arith.constant 0 : index
    %139 = vector.load %arg10[%c0_108, %c0_109, %c0_110] : memref<2x16x32xf32, #tpu.memory_space<vmem>>, vector<2x16x32xf32>
    tpu.vector_store %arg10[%c0_108, %c0_109, %c0_110], %138 {strides = array<i32>} : memref<2x16x32xf32, #tpu.memory_space<vmem>>, vector<2x16x32xf32>,
    return
  }
  func.func @transform_0(%arg0: i32) -> (i32, i32, i32) {
    %c0_i32 = arith.constant 0 : i32
    %c0_i32_0 = arith.constant 0 : i32
    %c0_i32_1 = arith.constant 0 : i32
    return %arg0, %c0_i32, %c0_i32_0 : i32, i32, i32
  }
  func.func @transform_1(%arg0: i32) -> (i32, i32) {
    %c0_i32 = arith.constant 0 : i32
    %c0_i32_0 = arith.constant 0 : i32
    %c0_i32_1 = arith.constant 0 : i32
    return %c0_i32, %c0_i32_0 : i32, i32
  }
  func.func @transform_2(%arg0: i32) -> (i32, i32) {
    %c0_i32 = arith.constant 0 : i32
    %c0_i32_0 = arith.constant 0 : i32
    %c0_i32_1 = arith.constant 0 : i32
    return %c0_i32, %c0_i32_0 : i32, i32
  }
  func.func @transform_3(%arg0: i32) -> i32 {
    %c0_i32 = arith.constant 0 : i32
    %c0_i32_0 = arith.constant 0 : i32
    return %c0_i32 : i32
  }
  func.func @transform_4(%arg0: i32) -> i32 {
    %c0_i32 = arith.constant 0 : i32
    %c0_i32_0 = arith.constant 0 : i32
    return %c0_i32 : i32
  }
  func.func @transform_5(%arg0: i32) -> (i32, i32) {
    %c0_i32 = arith.constant 0 : i32
    %c0_i32_0 = arith.constant 0 : i32
    %c0_i32_1 = arith.constant 0 : i32
    return %c0_i32, %c0_i32_0 : i32, i32
  }
  func.func @transform_6(%arg0: i32) -> (i32, i32) {
    %c0_i32 = arith.constant 0 : i32
    %c0_i32_0 = arith.constant 0 : i32
    %c0_i32_1 = arith.constant 0 : i32
    return %c0_i32, %c0_i32_0 : i32, i32
  }
  func.func @transform_7(%arg0: i32) -> (i32, i32) {
    %c0_i32 = arith.constant 0 : i32
    %c0_i32_0 = arith.constant 0 : i32
    %c0_i32_1 = arith.constant 0 : i32
    return %c0_i32, %c0_i32_0 : i32, i32
  }
  func.func @transform_8(%arg0: i32) -> (i32, i32) {
    %c0_i32 = arith.constant 0 : i32
    %c0_i32_0 = arith.constant 0 : i32
    %c0_i32_1 = arith.constant 0 : i32
    return %c0_i32, %c0_i32_0 : i32, i32
  }
  func.func @transform_9(%arg0: i32) -> (i32, i32, i32) {
    %c0_i32 = arith.constant 0 : i32
    %c0_i32_0 = arith.constant 0 : i32
    %c0_i32_1 = arith.constant 0 : i32
    return %arg0, %c0_i32, %c0_i32_0 : i32, i32, i32
  }
}

</mosaic_0001>

<bundles_post_ra>
// kernel: tpu_custom_call.1
= control target key start
LH: loop header
LB: loop body
LE: loop exit
PB: predicated region body
PF: predicated region fallthrough
CT: control target
= control target key end

     0   :  { %15 = vsyncpa [#allocation6], 0  ;;  %s2646_s0 = inlined_call_operand.vmem [shape: f32[2,16,32], index: 0, kind: input, shape index: {}]   ;;  %s2647_s1 = inlined_call_operand.vmem [shape: f32[1,32], index: 1, kind: input, shape index: {}]   ;;  %s2648_s2 = inlined_call_operand.vmem [shape: f32[1,32], index: 2, kind: input, shape index: {}]   ;;  %s2649_s3 = inlined_call_operand.vmem [shape: f32[3], index: 3, kind: input, shape index: {}]   ;;  %s2650_s4 = inlined_call_operand.<no memory space> [shape: f32[1], index: 4, kind: input, shape index: {}]   ;;  %s2651_s5 = inlined_call_operand.vmem [shape: bf16[32,128], index: 5, kind: input, shape index: {}]   ;;  %s2652_s6 = inlined_call_operand.vmem [shape: f32[1,128], index: 6, kind: input, shape index: {}]   ;;  %s2653_s7 = inlined_call_operand.vmem [shape: bf16[128,32], index: 7, kind: input, shape index: {}]   ;;  %s2654_s8 = inlined_call_operand.vmem [shape: f32[1,32], index: 8, kind: input, shape index: {}]   ;;  %s2655_s9 = inlined_call_operand.hbm [shape: f32[2,16,32], index: 9, kind: output, shape index: {}]  }
   0x1   :  { %16 = vsyncpa [#allocation5], 0  ;;  %s29_s11 = sshll.u32 %s2649_s3, 4  ;;  %s30_s11 = int_to_ptr.vmem [resolvable:$true] %s29_s11 }
   0x2   :  { %s1984_s12 = scalar_lea.vmem %s30_s11, 16  ;;  %p1989_p1 = scmp.lt.s32.totalorder %s30_s11, %s30_s11 }
   0x3   :  { %p1985_p0 = scmp.ne.s32.totalorder %s30_s11, %s1984_s12  ;;  %p1990_p2 = scmp.lt.s32.totalorder %s1984_s12, %s1984_s12 }
   0x5   :  { %p1991_p3 = por %p1990_p2, %p1989_p1 }
   0x7   :  { %p1992_p4 = pnand %p1991_p3, %p1985_p0 }
   0x9   :  { %1995 = shalt.err (!%p1992_p4)
}
   0xa   :  { %s2022_s13 = smov [#allocation4]  }
   0xb   :  { %32 = dma.vmem_to_smem %s30_s11, 16, %s2022_s13, [#allocation6]  }
   0xc   :  { %2018 = dma.done.wait [#allocation6], 16  }
   0xd   :  { %2019 = vsyncadd [#allocation6], 4294967280 }
   0xe   :  { %46 = sfence }
   0xf   :  { %v2084_v0 = vld [vmem:[%s2646_s0] sm:$0xff]  ;;  %vm58_vm0 = vcmask 261120   ;;  %v2093_v2 = vld [vmem:[%s2646_s0 + $0x10] sm:$0xff]  ;;  %v2102_v4 = vld [vmem:[%s2646_s0 + $0x8] sm:$0xff]  ;;  %vm84_vm1 = vcmask 253952   ;;  %vm76_vm2 = vcmask 260096   ;;  %v134_v26 = vlaneseq }
  0x10   :  { %v185_v1 = vsel %vm58_vm0, %v2084_v0, 0.0  ;;  %59 = vst.msk [vmem:[#allocation2] sm:$0xff] %vm58_vm0, %v2084_v0  ;;  %v191_v3 = vsel %vm58_vm0, %v2093_v2, 0.0  ;;  %61 = vst.msk [vmem:[#allocation2 + $0x10] sm:$0xff] %vm58_vm0, %v2093_v2  ;;  %v2107_v5 = vld [vmem:[%s2646_s0 + $0x18] sm:$0xff]  ;;  %v188_v6 = vsel %vm58_vm0, %v2102_v4, 0.0 }
  0x11   :  { %186 = vadd.xlane.f32.xlu0 %v185_v1  ;;  %192 = vadd.xlane.f32.xlu1 %v191_v3  ;;  %60 = vst.msk [vmem:[#allocation2 + $0x8] sm:$0xff] %vm58_vm0, %v2102_v4  ;;  %62 = vst.msk [vmem:[#allocation2 + $0x18] sm:$0xff] %vm58_vm0, %v2107_v5  ;;  %v194_v7 = vsel %vm58_vm0, %v2107_v5, 0.0  ;;  %v67_v8 = vld [vmem:[%s2646_s0 + $0x1] sm:$0xff]  ;;  %v69_v9 = vld [vmem:[%s2646_s0 + $0x11] sm:$0xff]  ;;  %v135_v31 = vshrl.u32 %v134_v26, 7 }
  0x12   :  { %v2126_v10 = vld [vmem:[%s2646_s0 + $0xf] sm:$0x1]  ;;  %v2134_v12 = vld [vmem:[%s2646_s0 + $0x1f] sm:$0x1]  ;;  %v2150_v27 = vld [vmem:[%s2646_s0] sm:$0x1] }
  0x13   :  { %v68_v11 = vld [vmem:[%s2646_s0 + $0x9] sm:$0x7f]  ;;  %v70_v13 = vld [vmem:[%s2646_s0 + $0x19] sm:$0x7f]  ;;  %v2155_v28 = vld [vmem:[%s2646_s0 + $0x10] sm:$0x1] }
  0x14   :  { %v92_v30 = vld [vmem:[%s2646_s0 + $0x8] sm:$0x7f]  ;;  %v94_v34 = vld [vmem:[%s2646_s0 + $0x18] sm:$0x7f]  ;;  %v2169_v44 = vsub.s32 0, %v135_v31  ;;  %vm128_vm3 = vcmask 259072   ;;  %vm2341_vm5 = vmpackc.low %vm58_vm0, %vm58_vm0 }
  0x15   :  { %189 = vadd.xlane.f32.xlu0 %v188_v6  ;;  %195 = vadd.xlane.f32.xlu1 %v194_v7  ;;  %v120_v47 = vld [vmem:[%s2646_s0 + $0xa] sm:$0x3f]  ;;  %v119_v48 = vld [vmem:[%s2646_s0 + $0x2] sm:$0xff]  ;;  %v122_v49 = vld [vmem:[%s2646_s0 + $0x1a] sm:$0x3f]  ;;  %vm144_vm4 = vcmask 254976  }
  0x16   :  { %v137_v45 = vrot.slane %v2126_v10, %v2169_v44  ;;  %v141_v46 = vrot.slane %v2134_v12, %v2169_v44  ;;  %v121_v50 = vld [vmem:[%s2646_s0 + $0x12] sm:$0xff]  ;;  %vm912_vm6 = vcmask 130048   ;;  %vm2024_vm7 = vmmov 0   ;;  %s1681_s13 = sld [smem:[#allocation4 + $0x2]] }
  0x17   :  { %v63_v14 = vld [vmem:[#allocation2] sm:$0xff]  ;;  %v65_v16 = vld [vmem:[#allocation2 + $0x10] sm:$0xff] }
  0x18   :  { %v71_v15 = vadd.f32 %v67_v8, %v63_v14  ;;  %v73_v17 = vadd.f32 %v69_v9, %v65_v16  ;;  %v64_v18 = vld [vmem:[#allocation2 + $0x8] sm:$0x7f]  ;;  %v80_v19 = vld [vmem:[#allocation2 + $0xf] sm:$0x1]  ;;  %v66_v20 = vld [vmem:[#allocation2 + $0x18] sm:$0x7f] }
  0x19   :  { %v72_v21 = vadd.f32 %v68_v11, %v64_v18  ;;  %v82_v22 = vadd.f32 %v80_v19, %v2126_v10  ;;  %v74_v23 = vadd.f32 %v70_v13, %v66_v20  ;;  %v81_v24 = vld [vmem:[#allocation2 + $0x1f] sm:$0x1]  ;;  %v168_v13 = vrot.slane %v2150_v27, %v2169_v44  ;;  %v152_v14 = vld [vmem:[%s2646_s0 + $0x8] sm:$0x3f]  ;;  %v154_v16 = vld [vmem:[%s2646_s0 + $0x18] sm:$0x3f] }
  0x1a   :  { %75 = vst.msk [vmem:[#allocation2] sm:$0xff] %vm58_vm0, %v71_v15  ;;  %78 = vst.msk [vmem:[#allocation2 + $0x10] sm:$0xff] %vm58_vm0, %v73_v17  ;;  %v83_v25 = vadd.f32 %v81_v24, %v2134_v12  ;;  %v172_v15 = vrot.slane %v2155_v28, %v2169_v44 }
  0x1b   :  { %77 = vst.msk [vmem:[#allocation2 + $0x8] sm:$0x7f] %vm76_vm2, %v72_v21  ;;  %79 = vst.msk [vmem:[#allocation2 + $0x18] sm:$0x7f] %vm76_vm2, %v74_v23 }
  0x1c   :  { %85 = vst.msk [vmem:[#allocation2 + $0xf] sm:$0x1] %vm84_vm1, %v82_v22  ;;  %86 = vst.msk [vmem:[#allocation2 + $0x1f] sm:$0x1] %vm84_vm1, %v83_v25 }
  0x21   :  { %v103_v29 = vld [vmem:[#allocation2] sm:$0x1]  ;;  %v104_v33 = vld [vmem:[#allocation2 + $0x10] sm:$0x1] }
  0x22   :  { %v105_v32 = vadd.f32 %v103_v29, %v2150_v27  ;;  %v106_v35 = vadd.f32 %v104_v33, %v2155_v28  ;;  %v87_v37 = vld [vmem:[#allocation2 + $0x1] sm:$0xff]  ;;  %v89_v38 = vld [vmem:[#allocation2 + $0x11] sm:$0xff] }
  0x23   :  { %v88_v36 = vld [vmem:[#allocation2 + $0x9] sm:$0x7f]  ;;  %v95_v40 = vadd.f32 %v87_v37, %v2084_v0  ;;  %v90_v41 = vld [vmem:[#allocation2 + $0x19] sm:$0x7f]  ;;  %v97_v42 = vadd.f32 %v89_v38, %v2093_v2 }
  0x24   :  { %107 = vst.msk [vmem:[#allocation2] sm:$0x1] %vm84_vm1, %v105_v32  ;;  %v96_v39 = vadd.f32 %v92_v30, %v88_v36  ;;  %108 = vst.msk [vmem:[#allocation2 + $0x10] sm:$0x1] %vm84_vm1, %v106_v35  ;;  %v98_v43 = vadd.f32 %v94_v34, %v90_v41 }
  0x25   :  { %99 = vst.msk [vmem:[#allocation2 + $0x1] sm:$0xff] %vm58_vm0, %v95_v40  ;;  %101 = vst.msk [vmem:[#allocation2 + $0x11] sm:$0xff] %vm58_vm0, %v97_v42 }
  0x26   :  { %100 = vst.msk [vmem:[#allocation2 + $0x9] sm:$0x7f] %vm76_vm2, %v96_v39  ;;  %102 = vst.msk [vmem:[#allocation2 + $0x19] sm:$0x7f] %vm76_vm2, %v98_v43 }
  0x2c   :  { %v109_v58 = vld [vmem:[#allocation2] sm:$0xff]  ;;  %v111_v7 = vld [vmem:[#allocation2 + $0x10] sm:$0xff] }
  0x2d   :  { %v132_v51 = vld [vmem:[#allocation2 + $0xe] sm:$0x3]  ;;  %v117_v53 = vld [vmem:[#allocation2 + $0x8] sm:$0x3f]  ;;  %v133_v55 = vld [vmem:[#allocation2 + $0x1e] sm:$0x3]  ;;  %v123_v62 = vadd.f32 %v119_v48, %v109_v58  ;;  %v125_v10 = vadd.f32 %v121_v50, %v111_v7 }
  0x2e   :  { %v110_v52 = vld [vmem:[#allocation2 + $0x8] sm:$0xff]  ;;  %v142_v54 = vadd.f32 %v137_v45, %v132_v51  ;;  %v124_v57 = vadd.f32 %v120_v47, %v117_v53  ;;  %v112_v59 = vld [vmem:[#allocation2 + $0x18] sm:$0xff]  ;;  %v143_v60 = vadd.f32 %v141_v46, %v133_v55  ;;  %v2193_v61 = vmul.f32 0.33333334, %v109_v58 }
  0x2f   :  { %v2191_v56 = vmul.f32 0.33333334, %v110_v52  ;;  %v2195_v63 = vmul.f32 0.33333334, %v112_v59  ;;  %v118_v1 = vld [vmem:[#allocation2 + $0x18] sm:$0x3f] }
  0x30   :  { %129 = vst.msk [vmem:[#allocation2 + $0x8] sm:$0x3f] %vm128_vm3, %v124_v57  ;;  %v126_v6 = vadd.f32 %v122_v49, %v118_v1  ;;  %v197_v8 = vsel %vm58_vm0, %v2193_v61, 0.0  ;;  %v2205_v9 = vmul.f32 0.33333334, %v111_v7 }
  0x31   :  { %v200_v3 = vsel %vm58_vm0, %v2191_v56, 0.0  ;;  %145 = vst.msk [vmem:[#allocation2 + $0xe] sm:$0x3] %vm144_vm4, %v142_v54  ;;  %146 = vst.msk [vmem:[#allocation2 + $0x1e] sm:$0x3] %vm144_vm4, %v143_v60  ;;  %198 = vadd.xlane.f32.xlu0 %v197_v8  ;;  %v206_v11 = vsel %vm58_vm0, %v2195_v63, 0.0 }
  0x32   :  { %201 = vadd.xlane.f32.xlu1 %v200_v3  ;;  %127 = vst.msk [vmem:[#allocation2] sm:$0xff] %vm58_vm0, %v123_v62  ;;  %130 = vst.msk [vmem:[#allocation2 + $0x10] sm:$0xff] %vm58_vm0, %v125_v10  ;;  %v203_v12 = vsel %vm58_vm0, %v2205_v9, 0.0 }
  0x33   :  { %131 = vst.msk [vmem:[#allocation2 + $0x18] sm:$0x3f] %vm128_vm3, %v126_v6 }
  0x35   :  { %204 = vadd.xlane.f32.xlu0 %v203_v12 }
  0x36   :  { %207 = vadd.xlane.f32.xlu1 %v206_v11 }
  0x38   :  { %v148_v17 = vld [vmem:[#allocation2 + $0xa] sm:$0x3f] }
  0x39   :  { %v147_v18 = vld [vmem:[#allocation2 + $0x2] sm:$0xff]  ;;  %v163_v19 = vld [vmem:[#allocation2] sm:$0x3]  ;;  %v156_v20 = vadd.f32 %v152_v14, %v148_v17  ;;  %v164_v26 = vld [vmem:[#allocation2 + $0x10] sm:$0x3] }
  0x3a   :  { %v155_v21 = vadd.f32 %v147_v18, %v2084_v0  ;;  %v173_v22 = vadd.f32 %v168_v13, %v163_v19  ;;  %v150_v23 = vld [vmem:[#allocation2 + $0x1a] sm:$0x3f]  ;;  %v149_v25 = vld [vmem:[#allocation2 + $0x12] sm:$0xff]  ;;  %v174_v28 = vadd.f32 %v172_v15, %v164_v26 }
  0x3b   :  { %v158_v24 = vadd.f32 %v154_v16, %v150_v23  ;;  %160 = vst.msk [vmem:[#allocation2 + $0xa] sm:$0x3f] %vm128_vm3, %v156_v20  ;;  %v157_v27 = vadd.f32 %v149_v25, %v2093_v2 }
  0x3c   :  { %159 = vst.msk [vmem:[#allocation2 + $0x2] sm:$0xff] %vm58_vm0, %v155_v21 }
  0x3d   :  { %175 = vst.msk [vmem:[#allocation2] sm:$0x3] %vm144_vm4, %v173_v22  ;;  %176 = vst.msk [vmem:[#allocation2 + $0x10] sm:$0x3] %vm144_vm4, %v174_v28 }
  0x3e   :  { %162 = vst.msk [vmem:[#allocation2 + $0x1a] sm:$0x3f] %vm128_vm3, %v158_v24 }
  0x3f   :  { %161 = vst.msk [vmem:[#allocation2 + $0x12] sm:$0xff] %vm58_vm0, %v157_v27 }
  0x43   :  { %v178_v29 = vld [vmem:[#allocation2 + $0x8] sm:$0xff] }
  0x44   :  { %v177_v30 = vld [vmem:[#allocation2] sm:$0xff]  ;;  %v2231_v31 = vmul.f32 0.2, %v178_v29 }
  0x45   :  { %v2233_v32 = vmul.f32 0.2, %v177_v30 }
  0x46   :  { %v180_v33 = vld [vmem:[#allocation2 + $0x18] sm:$0xff]  ;;  %v179_v34 = vld [vmem:[#allocation2 + $0x10] sm:$0xff]  ;;  %v212_v35 = vsel %vm58_vm0, %v2231_v31, 0.0 }
  0x47   :  { %v209_v36 = vsel %vm58_vm0, %v2233_v32, 0.0  ;;  %v2239_v37 = vmul.f32 0.2, %v180_v33  ;;  %v2241_v38 = vmul.f32 0.2, %v179_v34  ;;  %213 = vadd.xlane.f32.xlu1 %v212_v35 }
  0x48   :  { %210 = vadd.xlane.f32.xlu0 %v209_v36 }
  0x49   :  { %v218_v39 = vsel %vm58_vm0, %v2239_v37, 0.0  ;;  %v215_v40 = vsel %vm58_vm0, %v2241_v38, 0.0 }
  0x4b   :  { %219 = vadd.xlane.f32.xlu1 %v218_v39 }
  0x4c   :  { %216 = vadd.xlane.f32.xlu0 %v215_v40 }
  0x9e   :  { %v187_v41 = vpop.xlane.xlu0 %186  ;;  %v193_v43 = vpop.xlane.xlu1 %192 }
  0x9f   :  { %v222_v42 = vmul.f32 0.03125, %v187_v41  ;;  %v224_v44 = vmul.f32 0.03125, %v193_v43 }
  0xa1   :  { %v2248_v45 = vsub.f32 %v2084_v0, %v222_v42  ;;  %v2251_v46 = vsub.f32 %v2093_v2, %v224_v44 }
  0xa2   :  { %v190_v47 = vpop.xlane.xlu0 %189  ;;  %v196_v49 = vpop.xlane.xlu1 %195 }
  0xa3   :  { %v223_v48 = vmul.f32 0.03125, %v190_v47  ;;  %v246_v50 = vmul.f32 %v2248_v45, %v2248_v45  ;;  %v225_v51 = vmul.f32 0.03125, %v196_v49  ;;  %v248_v52 = vmul.f32 %v2251_v46, %v2251_v46 }
  0xa5   :  { %v2258_v53 = vsub.f32 %v2102_v4, %v223_v48  ;;  %v258_v54 = vsel %vm58_vm0, %v246_v50, 0.0  ;;  %v2262_v55 = vsub.f32 %v2107_v5, %v225_v51  ;;  %v264_v58 = vsel %vm58_vm0, %v248_v52, 0.0 }
  0xa6   :  { %259 = vadd.xlane.f32.xlu0 %v258_v54 }
  0xa7   :  { %v247_v57 = vmul.f32 %v2258_v53, %v2258_v53  ;;  %v249_v59 = vmul.f32 %v2262_v55, %v2262_v55 }
  0xa9   :  { %v261_v60 = vsel %vm58_vm0, %v247_v57, 0.0  ;;  %v267_v62 = vsel %vm58_vm0, %v249_v59, 0.0  ;;  %v2322_v59 = vld [vmem:[%s2647_s1] ss:$0 sm:$0xff]  ;;  %s1321_s1 = sld [smem:[#allocation4]] }
  0xaa   :  { %262 = vadd.xlane.f32.xlu1 %v261_v60  ;;  %265 = vadd.xlane.f32.xlu0 %v264_v58 }
  0xae   :  { %268 = vadd.xlane.f32.xlu1 %v267_v62  ;;  %v2328_v62 = vld [vmem:[%s2648_s2] ss:$0 sm:$0xff]  ;;  %s1680_s2 = sld [smem:[#allocation4 + $0x1]] }
  0xbe   :  { %v199_v6 = vpop.xlane.xlu0 %198 }
  0xbf   :  { %v202_v1 = vpop.xlane.xlu1 %201  ;;  %v226_v7 = vmul.f32 0.03125, %v199_v6 }
  0xc0   :  { %v227_v3 = vmul.f32 0.03125, %v202_v1 }
  0xc1   :  { %v2275_v10 = vsub.f32 %v2193_v61, %v226_v7 }
  0xc2   :  { %v2272_v8 = vsub.f32 %v2191_v56, %v227_v3  ;;  %v205_v13 = vpop.xlane.xlu0 %204 }
  0xc3   :  { %v208_v11 = vpop.xlane.xlu1 %207  ;;  %v228_v15 = vmul.f32 0.03125, %v205_v13  ;;  %v250_v16 = vmul.f32 %v2275_v10, %v2275_v10 }
  0xc4   :  { %v229_v12 = vmul.f32 0.03125, %v208_v11  ;;  %v251_v14 = vmul.f32 %v2272_v8, %v2272_v8 }
  0xc5   :  { %v2286_v56 = vsub.f32 %v2205_v9, %v228_v15  ;;  %v270_v61 = vsel %vm58_vm0, %v250_v16, 0.0 }
  0xc6   :  { %v2282_v17 = vsub.f32 %v2195_v63, %v229_v12  ;;  %v273_v18 = vsel %vm58_vm0, %v251_v14, 0.0  ;;  %271 = vadd.xlane.f32.xlu0 %v270_v61 }
  0xc7   :  { %274 = vadd.xlane.f32.xlu1 %v273_v18  ;;  %v252_v20 = vmul.f32 %v2286_v56, %v2286_v56 }
  0xc8   :  { %v253_v19 = vmul.f32 %v2282_v17, %v2282_v17 }
  0xc9   :  { %v276_v63 = vsel %vm58_vm0, %v252_v20, 0.0 }
  0xca   :  { %v279_v21 = vsel %vm58_vm0, %v253_v19, 0.0  ;;  %277 = vadd.xlane.f32.xlu0 %v276_v63 }
  0xcb   :  { %280 = vadd.xlane.f32.xlu1 %v279_v21 }
  0xd4   :  { %v214_v22 = vpop.xlane.xlu1 %213 }
  0xd5   :  { %v211_v23 = vpop.xlane.xlu0 %210  ;;  %v231_v9 = vmul.f32 0.03125, %v214_v22 }
  0xd6   :  { %v230_v24 = vmul.f32 0.03125, %v211_v23 }
  0xd7   :  { %v2296_v25 = vsub.f32 %v2231_v31, %v231_v9 }
  0xd8   :  { %v2299_v26 = vsub.f32 %v2233_v32, %v230_v24  ;;  %v220_v27 = vpop.xlane.xlu1 %219 }
  0xd9   :  { %v217_v28 = vpop.xlane.xlu0 %216  ;;  %v233_v29 = vmul.f32 0.03125, %v220_v27  ;;  %v255_v33 = vmul.f32 %v2296_v25, %v2296_v25 }
  0xda   :  { %v232_v30 = vmul.f32 0.03125, %v217_v28  ;;  %v254_v34 = vmul.f32 %v2299_v26, %v2299_v26 }
  0xdb   :  { %v2306_v35 = vsub.f32 %v2239_v37, %v233_v29  ;;  %v285_v31 = vsel %vm58_vm0, %v255_v33, 0.0 }
  0xdc   :  { %v2309_v36 = vsub.f32 %v2241_v38, %v232_v30  ;;  %v282_v32 = vsel %vm58_vm0, %v254_v34, 0.0  ;;  %286 = vadd.xlane.f32.xlu1 %v285_v31 }
  0xdd   :  { %283 = vadd.xlane.f32.xlu0 %v282_v32  ;;  %v257_v39 = vmul.f32 %v2306_v35, %v2306_v35 }
  0xde   :  { %v256_v40 = vmul.f32 %v2309_v36, %v2309_v36 }
  0xdf   :  { %v291_v41 = vsel %vm58_vm0, %v257_v39, 0.0 }
  0xe0   :  { %v288_v37 = vsel %vm58_vm0, %v256_v40, 0.0  ;;  %292 = vadd.xlane.f32.xlu1 %v291_v41 }
  0xe1   :  { %289 = vadd.xlane.f32.xlu0 %v288_v37 }
 0x133   :  { %v260_v38 = vpop.xlane.xlu0 %259 }
 0x134   :  { %v294_v42 = vmul.f32 0.03125, %v260_v38 }
 0x136   :  { %v306_v43 = vadd.f32 1e-05, %v294_v42 }
 0x137   :  { %v263_v44 = vpop.xlane.xlu1 %262  ;;  %v266_v47 = vpop.xlane.xlu0 %265 }
 0x138   :  { %1904 = vrsqrt.f32 %v306_v43  ;;  %v295_v48 = vmul.f32 0.03125, %v263_v44  ;;  %v296_v49 = vmul.f32 0.03125, %v266_v47 }
 0x13a   :  { %v307_v50 = vadd.f32 1e-05, %v295_v48  ;;  %v308_v51 = vadd.f32 1e-05, %v296_v49 }
 0x13b   :  { %v269_v52 = vpop.xlane.xlu1 %268 }
 0x13c   :  { %1906 = vrsqrt.f32 %v307_v50  ;;  %v297_v54 = vmul.f32 0.03125, %v269_v52 }
 0x13d   :  { %1908 = vrsqrt.f32 %v308_v51 }
 0x13e   :  { %v309_v57 = vadd.f32 1e-05, %v297_v54 }
 0x140   :  { %1910 = vrsqrt.f32 %v309_v57 }
 0x142   :  { %v1905_v58 = vpop.eup %1904 }
 0x143   :  { %v330_v60 = vmul.f32 %v1905_v58, %v2248_v45 }
 0x145   :  { %v348_v1 = vmul.f32 %v2322_v59, %v330_v60 }
 0x146   :  { %v1907_v3 = vpop.eup %1906 }
 0x147   :  { %v1909_v6 = vpop.eup %1908  ;;  %v366_v7 = vadd.f32 %v2328_v62, %v348_v1  ;;  %v331_v11 = vmul.f32 %v1907_v3, %v2258_v53 }
 0x148   :  { %v332_v12 = vmul.f32 %v1909_v6, %v2251_v46 }
 0x149   :  { %v378_v13 = vmul.f32 0.17677669, %v366_v7  ;;  %v349_v14 = vmul.f32 %v2322_v59, %v331_v11 }
 0x14a   :  { %v1911_v15 = vpop.eup %1910  ;;  %v350_v18 = vmul.f32 %v2322_v59, %v332_v12 }
 0x14b   :  { %v333_v45 = vmul.f32 %v1911_v15, %v2262_v55  ;;  %1750 = vmatprep.mubr.msk.f32.mxu0 %vm58_vm0, %v378_v13  ;;  %v367_v16 = vadd.f32 %v2328_v62, %v349_v14 }
 0x14c   :  { %v368_v55 = vadd.f32 %v2328_v62, %v350_v18 }
 0x14d   :  { %v2345_v53 = vpack.c.bf16 %v367_v16, %v366_v7  ;;  %v351_v46 = vmul.f32 %v2322_v59, %v333_v45  ;;  %v379_v9 = vmul.f32 0.17677669, %v367_v16 }
 0x14e   :  { %v380_v27 = vmul.f32 0.17677669, %v368_v55 }
 0x14f   :  { %1854 = vmatprep.subr.msk.bf16.mxu0 %vm2341_vm5, %v2345_v53  ;;  %v369_v19 = vadd.f32 %v2328_v62, %v351_v46 }
 0x150   :  { %1857 = vmatpush3.bf16.xpose.msk.msra.mxu0 %vm2341_vm5, %v2345_v53 }
 0x151   :  { %v2356_v20 = vpack.c.bf16 %v369_v19, %v368_v55  ;;  %v381_v39 = vmul.f32 0.17677669, %v369_v19 }
 0x153   :  { %1860 = vmatprep.subr.msk.bf16.mxu0 %vm2341_vm5, %v2356_v20  ;;  %v272_v22 = vpop.xlane.xlu0 %271 }
 0x154   :  { %v275_v21 = vpop.xlane.xlu1 %274  ;;  %v298_v23 = vmul.f32 0.03125, %v272_v22 }
 0x155   :  { %v299_v63 = vmul.f32 0.03125, %v275_v21 }
 0x156   :  { %v310_v28 = vadd.f32 1e-05, %v298_v23 }
 0x157   :  { %v311_v24 = vadd.f32 1e-05, %v299_v63  ;;  %1751 = vmatmul.mubr.msk.f32.vlgmr.msra.gmra.mrb[0].mxu0 %vm58_vm0, %v379_v9  ;;  %v278_v33 = vpop.xlane.xlu0 %277 }
 0x158   :  { %v281_v29 = vpop.xlane.xlu1 %280  ;;  %1863 = vmatpush3.bf16.xpose.msk.msra.mxu0 %vm2341_vm5, %v2356_v20  ;;  %1757 = vmatprep.mubr.msk.f32.mxu0 %vm58_vm0, %v380_v27  ;;  %v300_v34 = vmul.f32 0.03125, %v278_v33 }
 0x159   :  { %1912 = vrsqrt.f32 %v311_v24  ;;  %v301_v30 = vmul.f32 0.03125, %v281_v29 }
 0x15a   :  { %1914 = vrsqrt.f32 %v310_v28  ;;  %v312_v32 = vadd.f32 1e-05, %v300_v34 }
 0x15b   :  { %v313_v31 = vadd.f32 1e-05, %v301_v30 }
 0x15d   :  { %1916 = vrsqrt.f32 %v313_v31 }
 0x15e   :  { %1918 = vrsqrt.f32 %v312_v32 }
 0x15f   :  { %1758 = vmatmul.mubr.msk.f32.vlgmr.msra.gmra.mrb[2].mxu0 %vm58_vm0, %v381_v39  ;;  %v2023_v39 = vmov 0.0  }
 0x163   :  { %v1913_v40 = vpop.eup %1912 }
 0x164   :  { %v1915_v41 = vpop.eup %1914  ;;  %v335_v37 = vmul.f32 %v1913_v40, %v2272_v8 }
 0x165   :  { %v334_v38 = vmul.f32 %v1915_v41, %v2275_v10 }
 0x166   :  { %v353_v42 = vmul.f32 %v2322_v59, %v335_v37 }
 0x167   :  { %v1917_v43 = vpop.eup %1916  ;;  %v352_v44 = vmul.f32 %v2322_v59, %v334_v38 }
 0x168   :  { %v1919_v47 = vpop.eup %1918  ;;  %v371_v48 = vadd.f32 %v2328_v62, %v353_v42  ;;  %v337_v49 = vmul.f32 %v1917_v43, %v2282_v17 }
 0x169   :  { %v287_v50 = vpop.xlane.xlu1 %286  ;;  %v370_v52 = vadd.f32 %v2328_v62, %v352_v44  ;;  %v336_v54 = vmul.f32 %v1919_v47, %v2286_v56 }
 0x16a   :  { %v284_v51 = vpop.xlane.xlu0 %283  ;;  %v303_v57 = vmul.f32 0.03125, %v287_v50  ;;  %v355_v10 = vmul.f32 %v2322_v59, %v337_v49  ;;  %v383_v18 = vmul.f32 0.17677669, %v371_v48 }
 0x16b   :  { %v302_v8 = vmul.f32 0.03125, %v284_v51  ;;  %v2376_v58 = vpack.c.bf16 %v371_v48, %v370_v52  ;;  %v382_v60 = vmul.f32 0.17677669, %v370_v52  ;;  %v354_v1 = vmul.f32 %v2322_v59, %v336_v54 }
 0x16c   :  { %v315_v3 = vadd.f32 1e-05, %v303_v57  ;;  %v373_v7 = vadd.f32 %v2328_v62, %v355_v10 }
 0x16d   :  { %v314_v6 = vadd.f32 1e-05, %v302_v8  ;;  %v293_v17 = vpop.xlane.xlu1 %292  ;;  %1866 = vmatprep.subr.msk.bf16.mxu0 %vm2341_vm5, %v2376_v58  ;;  %1764 = vmatprep.mubr.msk.f32.mxu0 %vm58_vm0, %v382_v60  ;;  %v372_v11 = vadd.f32 %v2328_v62, %v354_v1 }
 0x16e   :  { %v290_v56 = vpop.xlane.xlu0 %289  ;;  %1920 = vrsqrt.f32 %v315_v3  ;;  %v305_v12 = vmul.f32 0.03125, %v293_v17  ;;  %1869 = vmatpush3.bf16.xpose.msk.msra.mxu0 %vm2341_vm5, %v2376_v58  ;;  %v385_v46 = vmul.f32 0.17677669, %v373_v7 }
 0x16f   :  { %v304_v13 = vmul.f32 0.03125, %v290_v56  ;;  %1922 = vrsqrt.f32 %v314_v6  ;;  %v2388_v14 = vpack.c.bf16 %v373_v7, %v372_v11  ;;  %v384_v15 = vmul.f32 0.17677669, %v372_v11 }
 0x170   :  { %v317_v45 = vadd.f32 1e-05, %v305_v12 }
 0x171   :  { %v316_v16 = vadd.f32 1e-05, %v304_v13  ;;  %1872 = vmatprep.subr.msk.bf16.mxu1 %vm2341_vm5, %v2388_v14  ;;  %1771 = vmatprep.mubr.msk.f32.mxu1 %vm58_vm0, %v384_v15 }
 0x172   :  { %1924 = vrsqrt.f32 %v317_v45  ;;  %1875 = vmatpush3.bf16.xpose.msk.msra.mxu1 %vm2341_vm5, %v2388_v14 }
 0x173   :  { %1926 = vrsqrt.f32 %v316_v16 }
 0x175   :  { %1765 = vmatmul.mubr.msk.f32.vlgmr.msra.gmra.mrb[4].mxu0 %vm58_vm0, %v383_v18 }
 0x178   :  { %v1921_v55 = vpop.eup %1920 }
 0x179   :  { %v1923_v19 = vpop.eup %1922  ;;  %v339_v21 = vmul.f32 %v1921_v55, %v2296_v25  ;;  %1772 = vmatmul.mubr.msk.f32.vlgmr.msra.gmra.mrb[0].mxu1 %vm58_vm0, %v385_v46 }
 0x17a   :  { %v338_v63 = vmul.f32 %v1923_v19, %v2299_v26 }
 0x17b   :  { %v357_v22 = vmul.f32 %v2322_v59, %v339_v21 }
 0x17c   :  { %v1925_v23 = vpop.eup %1924  ;;  %v356_v9 = vmul.f32 %v2322_v59, %v338_v63 }
 0x17d   :  { %v1927_v24 = vpop.eup %1926  ;;  %v341_v27 = vmul.f32 %v1925_v23, %v2306_v35  ;;  %v375_v28 = vadd.f32 %v2328_v62, %v357_v22 }
 0x17e   :  { %v340_v29 = vmul.f32 %v1927_v24, %v2309_v36  ;;  %v374_v30 = vadd.f32 %v2328_v62, %v356_v9 }
 0x17f   :  { %v359_v25 = vmul.f32 %v2322_v59, %v341_v27  ;;  %v387_v40 = vmul.f32 0.17677669, %v375_v28 }
 0x180   :  { %v2408_v33 = vpack.c.bf16 %v375_v28, %v374_v30  ;;  %v386_v34 = vmul.f32 0.17677669, %v374_v30  ;;  %v358_v26 = vmul.f32 %v2322_v59, %v340_v29 }
 0x181   :  { %v377_v31 = vadd.f32 %v2328_v62, %v359_v25 }
 0x182   :  { %1878 = vmatprep.subr.msk.bf16.mxu0 %vm2341_vm5, %v2408_v33  ;;  %1778 = vmatprep.mubr.msk.f32.mxu0 %vm58_vm0, %v386_v34  ;;  %v376_v35 = vadd.f32 %v2328_v62, %v358_v26 }
 0x183   :  { %1881 = vmatpush3.bf16.xpose.msk.msra.mxu0 %vm2341_vm5, %v2408_v33  ;;  %v389_v41 = vmul.f32 0.17677669, %v377_v31 }
 0x184   :  { %v2420_v36 = vpack.c.bf16 %v377_v31, %v376_v35  ;;  %v388_v32 = vmul.f32 0.17677669, %v376_v35  ;;  %1788 = vmatprep.subr.bf16.mxu0 %v2023_v39 }
 0x186   :  { %1884 = vmatprep.subr.msk.bf16.mxu1 %vm2341_vm5, %v2420_v36  ;;  %1785 = vmatprep.mubr.msk.f32.mxu1 %vm58_vm0, %v388_v32 }
 0x187   :  { %1887 = vmatpush3.bf16.xpose.msk.msra.mxu1 %vm2341_vm5, %v2420_v36 }
 0x188   :  { %1794 = vmatprep.subr.bf16.mxu1 %v2023_v39 }
 0x18a   :  { %1779 = vmatmul.mubr.msk.f32.vlgmr.msra.gmra.mrb[6].mxu0 %vm58_vm0, %v387_v40 }
 0x18b   :  { %1789 = vmatpush3.bf16.msra.mxu0 %v2345_v53  ;;  %1790 = vmatprep.mubr.msk.bf16.mxu0 %vm2024_vm7, %v2023_v39 }
 0x18c   :  { %1800 = vmatprep.subr.bf16.mxu0 %v2023_v39 }
 0x18e   :  { %1786 = vmatmul.mubr.msk.f32.vlgmr.msra.gmra.mrb[2].mxu1 %vm58_vm0, %v389_v41 }
 0x18f   :  { %1795 = vmatpush3.bf16.msra.mxu1 %v2356_v20  ;;  %1796 = vmatprep.mubr.msk.bf16.mxu1 %vm2024_vm7, %v2023_v39 }
 0x190   :  { %1806 = vmatprep.subr.bf16.mxu1 %v2023_v39 }
 0x22a   :  { %v1752_v37 = vpop.f32.mrb[0].mxu0 }
 0x22b   :  { %v468_v61 = vpop.f32.mrb[1].mxu0  ;;  %v916_v38 = vsel %vm912_vm6, %v1752_v37, -inf }
 0x22c   :  { %917 = vmax.xlane.f32.xlu1 %v916_v38  ;;  %v913_v42 = vsel %vm912_vm6, %v468_v61, -inf }
 0x22d   :  { %914 = vmax.xlane.f32.xlu0 %v913_v42 }
 0x232   :  { %v1759_v43 = vpop.f32.mrb[2].mxu0 }
 0x233   :  { %v555_v53 = vpop.f32.mrb[3].mxu0  ;;  %v922_v44 = vsel %vm912_vm6, %v1759_v43, -inf }
 0x234   :  { %923 = vmax.xlane.f32.xlu1 %v922_v44  ;;  %v919_v47 = vsel %vm912_vm6, %v555_v53, -inf }
 0x235   :  { %920 = vmax.xlane.f32.xlu0 %v919_v47 }
 0x248   :  { %v1766_v20 = vpop.f32.mrb[4].mxu0 }
 0x249   :  { %v642_v48 = vpop.f32.mrb[5].mxu0  ;;  %v928_v49 = vsel %vm912_vm6, %v1766_v20, -inf }
 0x24a   :  { %929 = vmax.xlane.f32.xlu1 %v928_v49  ;;  %v925_v50 = vsel %vm912_vm6, %v642_v48, -inf }
 0x24b   :  { %926 = vmax.xlane.f32.xlu0 %v925_v50 }
 0x24c   :  { %v1773_v51 = vpop.f32.mrb[0].mxu1 }
 0x24d   :  { %v729_v52 = vpop.f32.mrb[1].mxu1  ;;  %v934_v54 = vsel %vm912_vm6, %v1773_v51, -inf }
 0x24e   :  { %935 = vmax.xlane.f32.xlu1 %v934_v54  ;;  %v931_v57 = vsel %vm912_vm6, %v729_v52, -inf }
 0x24f   :  { %932 = vmax.xlane.f32.xlu0 %v931_v57 }
 0x25d   :  { %v2445_v8 = vpop.f32.mrb[6].mxu0 }
 0x25e   :  { %v2447_v10 = vpop.f32.mrb[7].mxu0  ;;  %v940_v60 = vsel %vm912_vm6, %v2445_v8, -inf }
 0x25f   :  { %941 = vmax.xlane.f32.xlu1 %v940_v60  ;;  %v937_v1 = vsel %vm912_vm6, %v2447_v10, -inf }
 0x260   :  { %938 = vmax.xlane.f32.xlu0 %v937_v1 }
 0x261   :  { %v2453_v3 = vpop.f32.mrb[2].mxu1 }
 0x262   :  { %v2455_v6 = vpop.f32.mrb[3].mxu1  ;;  %v946_v7 = vsel %vm912_vm6, %v2453_v3, -inf }
 0x263   :  { %947 = vmax.xlane.f32.xlu1 %v946_v7  ;;  %v943_v17 = vsel %vm912_vm6, %v2455_v6, -inf }
 0x264   :  { %944 = vmax.xlane.f32.xlu0 %v943_v17 }
 0x2b9   :  { %v918_v56 = vpop.xlane.xlu1 %917 }
 0x2ba   :  { %v950_v11 = vsub.f32 %v1752_v37, %v918_v56  ;;  %v915_v12 = vpop.xlane.xlu0 %914 }
 0x2bb   :  { %v949_v13 = vsub.f32 %v468_v61, %v915_v12 }
 0x2bc   :  { %v963_v15 = vmul.f32 1.442695, %v950_v11 }
 0x2bd   :  { %v961_v45 = vmul.f32 1.442695, %v949_v13 }
 0x2be   :  { %1928 = vpow2.f32 %v963_v15 }
 0x2bf   :  { %1930 = vpow2.f32 %v961_v45 }
 0x2c1   :  { %v924_v16 = vpop.xlane.xlu1 %923 }
 0x2c2   :  { %v952_v18 = vsub.f32 %v1759_v43, %v924_v16  ;;  %v921_v46 = vpop.xlane.xlu0 %920 }
 0x2c3   :  { %v951_v55 = vsub.f32 %v555_v53, %v921_v46 }
 0x2c4   :  { %v967_v19 = vmul.f32 1.442695, %v952_v18 }
 0x2c5   :  { %v965_v21 = vmul.f32 1.442695, %v951_v55 }
 0x2c6   :  { %1932 = vpow2.f32 %v967_v19 }
 0x2c7   :  { %1934 = vpow2.f32 %v965_v21 }
 0x2c8   :  { %v2461_v63 = vpop.eup %1928 }
 0x2c9   :  { %v2463_v22 = vpop.eup %1930  ;;  %v988_v23 = vsel %vm912_vm6, %v2461_v63, 0.0 }
 0x2ca   :  { %989 = vadd.xlane.f32.xlu1 %v988_v23  ;;  %v985_v9 = vsel %vm912_vm6, %v2463_v22, 0.0 }
 0x2cb   :  { %986 = vadd.xlane.f32.xlu0 %v985_v9 }
 0x2d0   :  { %v2469_v24 = vpop.eup %1932 }
 0x2d1   :  { %v2471_v27 = vpop.eup %1934  ;;  %v994_v28 = vsel %vm912_vm6, %v2469_v24, 0.0 }
 0x2d2   :  { %995 = vadd.xlane.f32.xlu1 %v994_v28  ;;  %v991_v29 = vsel %vm912_vm6, %v2471_v27, 0.0 }
 0x2d3   :  { %992 = vadd.xlane.f32.xlu0 %v991_v29 }
 0x2d7   :  { %v930_v30 = vpop.xlane.xlu1 %929 }
 0x2d8   :  { %v954_v25 = vsub.f32 %v1766_v20, %v930_v30  ;;  %v927_v34 = vpop.xlane.xlu0 %926 }
 0x2d9   :  { %v953_v26 = vsub.f32 %v642_v48, %v927_v34 }
 0x2da   :  { %v971_v31 = vmul.f32 1.442695, %v954_v25 }
 0x2db   :  { %v969_v35 = vmul.f32 1.442695, %v953_v26  ;;  %v936_v32 = vpop.xlane.xlu1 %935 }
 0x2dc   :  { %1936 = vpow2.f32 %v971_v31  ;;  %v956_v40 = vsub.f32 %v1773_v51, %v936_v32  ;;  %v933_v41 = vpop.xlane.xlu0 %932 }
 0x2dd   :  { %1938 = vpow2.f32 %v969_v35  ;;  %v955_v37 = vsub.f32 %v729_v52, %v933_v41 }
 0x2de   :  { %v975_v61 = vmul.f32 1.442695, %v956_v40 }
 0x2df   :  { %v973_v38 = vmul.f32 1.442695, %v955_v37 }
 0x2e0   :  { %1940 = vpow2.f32 %v975_v61 }
 0x2e1   :  { %1942 = vpow2.f32 %v973_v38 }
 0x2e6   :  { %v2477_v42 = vpop.eup %1936 }
 0x2e7   :  { %v2479_v43 = vpop.eup %1938  ;;  %v1000_v53 = vsel %vm912_vm6, %v2477_v42, 0.0 }
 0x2e8   :  { %1001 = vadd.xlane.f32.xlu1 %v1000_v53  ;;  %v997_v44 = vsel %vm912_vm6, %v2479_v43, 0.0 }
 0x2e9   :  { %998 = vadd.xlane.f32.xlu0 %v997_v44 }
 0x2ea   :  { %v2485_v47 = vpop.eup %1940 }
 0x2eb   :  { %v2487_v20 = vpop.eup %1942  ;;  %v1006_v48 = vsel %vm912_vm6, %v2485_v47, 0.0 }
 0x2ec   :  { %v942_v49 = vpop.xlane.xlu1 %941  ;;  %1007 = vadd.xlane.f32.xlu1 %v1006_v48  ;;  %v1003_v50 = vsel %vm912_vm6, %v2487_v20, 0.0 }
 0x2ed   :  { %v958_v51 = vsub.f32 %v2445_v8, %v942_v49  ;;  %v939_v52 = vpop.xlane.xlu0 %938  ;;  %1004 = vadd.xlane.f32.xlu0 %v1003_v50 }
 0x2ee   :  { %v957_v54 = vsub.f32 %v2447_v10, %v939_v52 }
 0x2ef   :  { %v979_v57 = vmul.f32 1.442695, %v958_v51 }
 0x2f0   :  { %v977_v60 = vmul.f32 1.442695, %v957_v54  ;;  %v948_v1 = vpop.xlane.xlu1 %947 }
 0x2f1   :  { %1944 = vpow2.f32 %v979_v57  ;;  %v960_v7 = vsub.f32 %v2453_v3, %v948_v1  ;;  %v945_v17 = vpop.xlane.xlu0 %944 }
 0x2f2   :  { %1946 = vpow2.f32 %v977_v60  ;;  %v959_v56 = vsub.f32 %v2455_v6, %v945_v17 }
 0x2f3   :  { %v983_v11 = vmul.f32 1.442695, %v960_v7 }
 0x2f4   :  { %v981_v12 = vmul.f32 1.442695, %v959_v56 }
 0x2f5   :  { %1948 = vpow2.f32 %v983_v11 }
 0x2f6   :  { %1950 = vpow2.f32 %v981_v12 }
 0x2fb   :  { %v2501_v8 = vpop.eup %1944 }
 0x2fc   :  { %v2503_v13 = vpop.eup %1946  ;;  %v1012_v10 = vsel %vm912_vm6, %v2501_v8, 0.0 }
 0x2fd   :  { %1013 = vadd.xlane.f32.xlu1 %v1012_v10  ;;  %v1009_v15 = vsel %vm912_vm6, %v2503_v13, 0.0 }
 0x2fe   :  { %1010 = vadd.xlane.f32.xlu0 %v1009_v15 }
 0x2ff   :  { %v2509_v3 = vpop.eup %1948 }
 0x300   :  { %v2511_v45 = vpop.eup %1950  ;;  %v1018_v6 = vsel %vm912_vm6, %v2509_v3, 0.0 }
 0x301   :  { %1019 = vadd.xlane.f32.xlu1 %v1018_v6  ;;  %v1015_v16 = vsel %vm912_vm6, %v2511_v45, 0.0 }
 0x302   :  { %1016 = vadd.xlane.f32.xlu0 %v1015_v16 }
 0x357   :  { %v990_v18 = vpop.xlane.xlu1 %989 }
 0x358   :  { %1952 = vrcp.f32 %v990_v18  ;;  %v987_v46 = vpop.xlane.xlu0 %986 }
 0x359   :  { %1954 = vrcp.f32 %v987_v46 }
 0x35f   :  { %v996_v55 = vpop.xlane.xlu1 %995 }
 0x360   :  { %1956 = vrcp.f32 %v996_v55  ;;  %v993_v19 = vpop.xlane.xlu0 %992 }
 0x361   :  { %1958 = vrcp.f32 %v993_v19 }
 0x362   :  { %v1953_v21 = vpop.eup %1952 }
 0x363   :  { %v1955_v23 = vpop.eup %1954  ;;  %v1034_v9 = vmul.f32 %v1953_v21, %v2461_v63 }
 0x364   :  { %v1033_v28 = vmul.f32 %v1955_v23, %v2463_v22 }
 0x366   :  { %v1045_v29 = vpack.c.bf16 %v1034_v9, %v1033_v28 }
 0x368   :  { %1791 = vmatmul.mubr.msk.bf16.vlgmr.msra.gmra.mrb[8].mxu0 %vm912_vm6, %v1045_v29 }
 0x369   :  { %1801 = vmatpush3.bf16.msra.mxu0 %v2376_v58  ;;  %1802 = vmatprep.mubr.msk.bf16.mxu0 %vm2024_vm7, %v2023_v39 }
 0x36a   :  { %v1957_v30 = vpop.eup %1956  ;;  %1812 = vmatprep.subr.bf16.mxu0 %v2023_v39 }
 0x36b   :  { %v1959_v25 = vpop.eup %1958  ;;  %v1036_v34 = vmul.f32 %v1957_v30, %v2469_v24 }
 0x36c   :  { %v1035_v26 = vmul.f32 %v1959_v25, %v2471_v27 }
 0x36e   :  { %v1046_v31 = vpack.c.bf16 %v1036_v34, %v1035_v26 }
 0x370   :  { %1797 = vmatmul.mubr.msk.bf16.vlgmr.msra.gmra.mrb[4].mxu1 %vm912_vm6, %v1046_v31 }
 0x371   :  { %1807 = vmatpush3.bf16.msra.mxu1 %v2388_v14  ;;  %1808 = vmatprep.mubr.msk.bf16.mxu1 %vm2024_vm7, %v2023_v39 }
 0x372   :  { %1818 = vmatprep.subr.bf16.mxu1 %v2023_v39 }
 0x375   :  { %v1002_v58 = vpop.xlane.xlu1 %1001 }
 0x376   :  { %1960 = vrcp.f32 %v1002_v58  ;;  %v999_v63 = vpop.xlane.xlu0 %998  ;;  %v1338_v58 = vstv %s1681_s13 }
 0x377   :  { %1962 = vrcp.f32 %v999_v63 }
 0x379   :  { %v1008_v22 = vpop.xlane.xlu1 %1007 }
 0x37a   :  { %1964 = vrcp.f32 %v1008_v22  ;;  %v1005_v35 = vpop.xlane.xlu0 %1004 }
 0x37b   :  { %1966 = vrcp.f32 %v1005_v35 }
 0x380   :  { %v1961_v24 = vpop.eup %1960 }
 0x381   :  { %v1963_v27 = vpop.eup %1962  ;;  %v1038_v32 = vmul.f32 %v1961_v24, %v2477_v42  ;;  %v1348_v24 = vstv %s2650_s4 }
 0x382   :  { %v1037_v40 = vmul.f32 %v1963_v27, %v2479_v43 }
 0x384   :  { %v1965_v14 = vpop.eup %1964  ;;  %v1047_v41 = vpack.c.bf16 %v1038_v32, %v1037_v40 }
 0x385   :  { %v1967_v37 = vpop.eup %1966  ;;  %v1040_v61 = vmul.f32 %v1965_v14, %v2485_v47 }
 0x386   :  { %v1039_v38 = vmul.f32 %v1967_v37, %v2487_v20  ;;  %1803 = vmatmul.mubr.msk.bf16.vlgmr.msra.gmra.mrb[12].mxu0 %vm912_vm6, %v1047_v41 }
 0x387   :  { %1813 = vmatpush3.bf16.msra.mxu0 %v2408_v33  ;;  %1814 = vmatprep.mubr.msk.bf16.mxu0 %vm2024_vm7, %v2023_v39 }
 0x388   :  { %v1048_v53 = vpack.c.bf16 %v1040_v61, %v1039_v38 }
 0x38a   :  { %v1014_v44 = vpop.xlane.xlu1 %1013  ;;  %1809 = vmatmul.mubr.msk.bf16.vlgmr.msra.gmra.mrb[8].mxu1 %vm912_vm6, %v1048_v53 }
 0x38b   :  { %1968 = vrcp.f32 %v1014_v44  ;;  %1819 = vmatpush3.bf16.msra.mxu1 %v2420_v36  ;;  %v1011_v42 = vpop.xlane.xlu0 %1010  ;;  %1820 = vmatprep.mubr.msk.bf16.mxu1 %vm2024_vm7, %v2023_v39 }
 0x38c   :  { %1970 = vrcp.f32 %v1011_v42 }
 0x38e   :  { %v1020_v43 = vpop.xlane.xlu1 %1019 }
 0x38f   :  { %1972 = vrcp.f32 %v1020_v43  ;;  %v1017_v47 = vpop.xlane.xlu0 %1016 }
 0x390   :  { %1974 = vrcp.f32 %v1017_v47 }
 0x395   :  { %v1969_v33 = vpop.eup %1968 }
 0x396   :  { %v1971_v20 = vpop.eup %1970  ;;  %v1042_v48 = vmul.f32 %v1969_v33, %v2501_v8  ;;  %v1322_v8 = vstv %s1321_s1 }
 0x397   :  { %v1041_v49 = vmul.f32 %v1971_v20, %v2503_v13  ;;  %v1328_v13 = vstv %s1680_s2 }
 0x399   :  { %v1973_v50 = vpop.eup %1972  ;;  %v1049_v51 = vpack.c.bf16 %v1042_v48, %v1041_v49 }
 0x39a   :  { %v1975_v52 = vpop.eup %1974  ;;  %v1044_v36 = vmul.f32 %v1973_v50, %v2509_v3 }
 0x39b   :  { %v1043_v54 = vmul.f32 %v1975_v52, %v2511_v45  ;;  %1815 = vmatmul.mubr.msk.bf16.vlgmr.msra.gmra.mrb[16].mxu0 %vm912_vm6, %v1049_v51 }
 0x39d   :  { %v1050_v39 = vpack.c.bf16 %v1044_v36, %v1043_v54 }
 0x39f   :  { %1821 = vmatmul.mubr.msk.bf16.vlgmr.msra.gmra.mrb[12].mxu1 %vm912_vm6, %v1050_v39 }
 0x43b   :  { %v1094_v57 = vpop.f32.mrb[8].mxu0 }
 0x43c   :  { %v1792_v60 = vpop.f32.mrb[9].mxu0  ;;  %v1323_v15 = vmul.f32 %v1322_v8, %v1094_v57 }
 0x43d   :  { %v1097_v1 = vpop.f32.mrb[10].mxu0 }
 0x43e   :  { %v1793_v7 = vpop.f32.mrb[11].mxu0  ;;  %v1324_v16 = vmul.f32 %v1322_v8, %v1097_v1 }
 0x443   :  { %v1138_v17 = vpop.f32.mrb[4].mxu1 }
 0x444   :  { %v1798_v56 = vpop.f32.mrb[5].mxu1  ;;  %v1325_v21 = vmul.f32 %v1322_v8, %v1138_v17 }
 0x445   :  { %v1141_v11 = vpop.f32.mrb[6].mxu1 }
 0x446   :  { %v1799_v12 = vpop.f32.mrb[7].mxu1  ;;  %v1326_v30 = vmul.f32 %v1322_v8, %v1141_v11 }
 0x459   :  { %v1182_v10 = vpop.f32.mrb[12].mxu0 }
 0x45a   :  { %v1329_v3 = vmul.f32 %v1328_v13, %v1182_v10  ;;  %v1804_v45 = vpop.f32.mrb[13].mxu0 }
 0x45b   :  { %v1185_v6 = vpop.f32.mrb[14].mxu0 }
 0x45c   :  { %v1333_v18 = vadd.f32 %v1329_v3, %v1323_v15  ;;  %v1330_v46 = vmul.f32 %v1328_v13, %v1185_v6  ;;  %v1805_v55 = vpop.f32.mrb[15].mxu0 }
 0x45d   :  { %v1226_v19 = vpop.f32.mrb[8].mxu1  ;;  %v1894_v55 = vld [vmem:[%s2651_s5] sm:$0xff]  }
 0x45e   :  { %v1334_v23 = vadd.f32 %v1330_v46, %v1324_v16  ;;  %v1331_v9 = vmul.f32 %v1328_v13, %v1226_v19  ;;  %v1810_v28 = vpop.f32.mrb[9].mxu1  ;;  %1824 = vmatprep.subr.bf16.mxu0 %v1894_v55  ;;  %v1895_v19 = vld [vmem:[%s2651_s5 + $0x8] sm:$0xff]  }
 0x45f   :  { %v1229_v29 = vpop.f32.mrb[10].mxu1  ;;  %1825 = vmatpush3.bf16.msra.mxu0 %v1894_v55  ;;  %v1899_v28 = vld [vmem:[%s2653_s7 + $0x18] sm:$0xff]  }
 0x460   :  { %v1335_v25 = vadd.f32 %v1331_v9, %v1325_v21  ;;  %v1332_v34 = vmul.f32 %v1328_v13, %v1229_v29  ;;  %v1811_v26 = vpop.f32.mrb[11].mxu1  ;;  %1826 = vmatprep.subr.bf16.mxu0 %v1895_v19  ;;  %v1896_v21 = vld [vmem:[%s2653_s7] sm:$0xff]   ;;  %v1898_v9 = vld [vmem:[%s2653_s7 + $0x10] sm:$0xff]  }
 0x461   :  { %1832 = vmatprep.subr.bf16.mxu1 %v1896_v21  ;;  %v1900_v29 = vld [vmem:[%s2653_s7 + $0x20] sm:$0xff]  }
 0x462   :  { %v1336_v31 = vadd.f32 %v1332_v34, %v1326_v30  ;;  %1833 = vmatpush3.bf16.msra.mxu1 %v1896_v21  ;;  %v1901_v30 = vld [vmem:[%s2653_s7 + $0x28] sm:$0xff]  }
 0x463   :  { %1827 = vmatpush3.bf16.msra.mxu0 %v1895_v19 }
 0x46e   :  { %v1270_v63 = vpop.f32.mrb[16].mxu0 }
 0x46f   :  { %v1339_v22 = vmul.f32 %v1338_v58, %v1270_v63  ;;  %v1816_v35 = vpop.f32.mrb[17].mxu0 }
 0x470   :  { %v1273_v27 = vpop.f32.mrb[18].mxu0 }
 0x471   :  { %v1343_v32 = vadd.f32 %v1339_v22, %v1333_v18  ;;  %v1340_v40 = vmul.f32 %v1338_v58, %v1273_v27  ;;  %v1817_v14 = vpop.f32.mrb[19].mxu0 }
 0x472   :  { %v1314_v41 = vpop.f32.mrb[12].mxu1 }
 0x473   :  { %v1349_v37 = vadd.f32 %v1348_v24, %v1343_v32  ;;  %v1344_v61 = vadd.f32 %v1340_v40, %v1334_v23  ;;  %v1341_v38 = vmul.f32 %v1338_v58, %v1314_v41  ;;  %v1822_v53 = vpop.f32.mrb[13].mxu1  ;;  %v1897_v23 = vld [vmem:[%s2653_s7 + $0x8] sm:$0xff]  }
 0x474   :  { %v1317_v44 = vpop.f32.mrb[14].mxu1  ;;  %1834 = vmatprep.subr.bf16.mxu1 %v1897_v23 }
 0x475   :  { %v1350_v42 = vadd.f32 %v1348_v24, %v1344_v61  ;;  %v1345_v43 = vadd.f32 %v1341_v38, %v1335_v25  ;;  %v1342_v47 = vmul.f32 %v1338_v58, %v1317_v44  ;;  %v1823_v33 = vpop.f32.mrb[15].mxu1  ;;  %v2553_v20 = vsub.f32 %v2084_v0, %v1349_v37  ;;  %1835 = vmatpush3.bf16.msra.mxu1 %v1897_v23 }
 0x476   :  { %1836 = vmatprep.subr.bf16.mxu1 %v1898_v9 }
 0x477   :  { %v1351_v48 = vadd.f32 %v1348_v24, %v1345_v43  ;;  %v1346_v49 = vadd.f32 %v1342_v47, %v1336_v31  ;;  %v1357_v50 = vsel %vm58_vm0, %v2553_v20, 0.0  ;;  %v2558_v51 = vsub.f32 %v2102_v4, %v1350_v42 }
 0x478   :  { %1358 = vadd.xlane.f32.xlu0 %v1357_v50 }
 0x479   :  { %v1352_v52 = vadd.f32 %v1348_v24, %v1346_v49  ;;  %v1360_v36 = vsel %vm58_vm0, %v2558_v51, 0.0  ;;  %v2563_v54 = vsub.f32 %v2093_v2, %v1351_v48  ;;  %1837 = vmatpush3.bf16.msra.mxu1 %v1898_v9 }
 0x47a   :  { %1361 = vadd.xlane.f32.xlu1 %v1360_v36  ;;  %1838 = vmatprep.subr.bf16.mxu1 %v1899_v28 }
 0x47b   :  { %v1363_v0 = vsel %vm58_vm0, %v2563_v54, 0.0  ;;  %v2568_v39 = vsub.f32 %v2107_v5, %v1352_v52 }
 0x47c   :  { %1364 = vadd.xlane.f32.xlu0 %v1363_v0 }
 0x47d   :  { %v1366_v4 = vsel %vm58_vm0, %v2568_v39, 0.0  ;;  %1839 = vmatpush3.bf16.msra.mxu1 %v1899_v28 }
 0x47e   :  { %1367 = vadd.xlane.f32.xlu1 %v1366_v4  ;;  %1840 = vmatprep.subr.bf16.mxu1 %v1900_v29 }
 0x481   :  { %1841 = vmatpush3.bf16.msra.mxu1 %v1900_v29 }
 0x482   :  { %1842 = vmatprep.subr.bf16.mxu1 %v1901_v30 }
 0x485   :  { %1843 = vmatpush3.bf16.msra.mxu1 %v1901_v30 }
 0x505   :  { %v1359_v57 = vpop.xlane.xlu0 %1358 }
 0x506   :  { %v1369_v60 = vmul.f32 0.03125, %v1359_v57  ;;  %v1902_v57 = vld [vmem:[%s2653_s7 + $0x30] sm:$0xff]  }
 0x507   :  { %v1362_v1 = vpop.xlane.xlu1 %1361  ;;  %1844 = vmatprep.subr.bf16.mxu1 %v1902_v57 }
 0x508   :  { %v1373_v7 = vsub.f32 %v2553_v20, %v1369_v60  ;;  %v1370_v17 = vmul.f32 0.03125, %v1362_v1  ;;  %1845 = vmatpush3.bf16.msra.mxu1 %v1902_v57  ;;  %v1682_v60 = vld [vmem:[%s2652_s6] ss:$0 sm:$0xff]  ;;  %s2025_s6 = smov [#allocation7]  }
 0x509   :  { %v1365_v2 = vpop.xlane.xlu0 %1364  ;;  %s1636_s2 = sshll.u32 %s2025_s6, 4  ;;  %s1637_s2 = int_to_ptr.vmem [resolvable:$true] %s1636_s2 }
 0x50a   :  { %v1374_v56 = vsub.f32 %v2558_v51, %v1370_v17  ;;  %v1371_v11 = vmul.f32 0.03125, %v1365_v2  ;;  %v1377_v12 = vmul.f32 %v1373_v7, %v1373_v7  ;;  %p2001_p6 = scmp.lt.s32.totalorder %s1637_s2, %s1637_s2 }
 0x50b   :  { %v1368_v8 = vpop.xlane.xlu1 %1367 }
 0x50c   :  { %v1375_v5 = vsub.f32 %v2563_v54, %v1371_v11  ;;  %v1372_v13 = vmul.f32 0.03125, %v1368_v8  ;;  %v1381_v10 = vsel %vm58_vm0, %v1377_v12, 0.0  ;;  %v1378_v15 = vmul.f32 %v1374_v56, %v1374_v56 }
 0x50d   :  { %1382 = vadd.xlane.f32.xlu0 %v1381_v10 }
 0x50e   :  { %v1376_v3 = vsub.f32 %v2568_v39, %v1372_v13  ;;  %v1384_v45 = vsel %vm58_vm0, %v1378_v15, 0.0  ;;  %v1379_v6 = vmul.f32 %v1375_v5, %v1375_v5 }
 0x50f   :  { %1385 = vadd.xlane.f32.xlu1 %v1384_v45  ;;  %v1687_v45 = vld [vmem:[%s2654_s8] ss:$0 sm:$0xff]  ;;  %s1996_s8 = scalar_lea.vmem %s1637_s2, 512 }
 0x510   :  { %v1387_v16 = vsel %vm58_vm0, %v1379_v6, 0.0  ;;  %v1380_v18 = vmul.f32 %v1376_v3, %v1376_v3  ;;  %p1997_p5 = scmp.ne.s32.totalorder %s1637_s2, %s1996_s8  ;;  %p2002_p7 = scmp.lt.s32.totalorder %s1996_s8, %s1996_s8 }
 0x511   :  { %1388 = vadd.xlane.f32.xlu0 %v1387_v16 }
 0x512   :  { %v1390_v46 = vsel %vm58_vm0, %v1380_v18, 0.0  ;;  %p2003_p8 = por %p2002_p7, %p2001_p6 }
 0x513   :  { %1391 = vadd.xlane.f32.xlu1 %v1390_v46 }
 0x514   :  { %p2004_p9 = pnand %p2003_p8, %p1997_p5 }
 0x59a   :  { %v1383_v25 = vpop.xlane.xlu0 %1382 }
 0x59b   :  { %v1393_v34 = vmul.f32 0.03125, %v1383_v25 }
 0x59c   :  { %v1386_v26 = vpop.xlane.xlu1 %1385 }
 0x59d   :  { %v1397_v31 = vadd.f32 1e-05, %v1393_v34  ;;  %v1394_v58 = vmul.f32 0.03125, %v1386_v26 }
 0x59e   :  { %v1389_v63 = vpop.xlane.xlu0 %1388 }
 0x59f   :  { %1976 = vrsqrt.f32 %v1397_v31  ;;  %v1398_v22 = vadd.f32 1e-05, %v1394_v58  ;;  %v1395_v35 = vmul.f32 0.03125, %v1389_v63 }
 0x5a0   :  { %v1392_v24 = vpop.xlane.xlu1 %1391 }
 0x5a1   :  { %1978 = vrsqrt.f32 %v1398_v22  ;;  %v1399_v27 = vadd.f32 1e-05, %v1395_v35  ;;  %v1396_v32 = vmul.f32 0.03125, %v1392_v24 }
 0x5a3   :  { %1980 = vrsqrt.f32 %v1399_v27  ;;  %v1400_v40 = vadd.f32 1e-05, %v1396_v32 }
 0x5a5   :  { %1982 = vrsqrt.f32 %v1400_v40 }
 0x5a9   :  { %v1977_v14 = vpop.eup %1976 }
 0x5aa   :  { %v1405_v41 = vmul.f32 %v1977_v14, %v1373_v7 }
 0x5ab   :  { %v1979_v37 = vpop.eup %1978 }
 0x5ac   :  { %v1406_v61 = vmul.f32 %v1979_v37, %v1374_v56  ;;  %v1409_v38 = vmul.f32 %v2322_v59, %v1405_v41 }
 0x5ad   :  { %v1981_v53 = vpop.eup %1980 }
 0x5ae   :  { %v1407_v44 = vmul.f32 %v1981_v53, %v1375_v5  ;;  %v1410_v42 = vmul.f32 %v2322_v59, %v1406_v61  ;;  %v1413_v48 = vadd.f32 %v2328_v62, %v1409_v38 }
 0x5af   :  { %v1983_v43 = vpop.eup %1982 }
 0x5b0   :  { %v1411_v47 = vmul.f32 %v2322_v59, %v1407_v44  ;;  %v1408_v33 = vmul.f32 %v1983_v43, %v1376_v3  ;;  %v1414_v49 = vadd.f32 %v2328_v62, %v1410_v42 }
 0x5b2   :  { %v1412_v50 = vmul.f32 %v2322_v59, %v1408_v33  ;;  %v1417_v52 = vpack.c.bf16 %v1414_v49, %v1413_v48  ;;  %v1415_v36 = vadd.f32 %v2328_v62, %v1411_v47  ;;  %v1903_v59 = vld [vmem:[%s2653_s7 + $0x38] sm:$0xff]  }
 0x5b3   :  { %1846 = vmatprep.subr.bf16.mxu1 %v1903_v59 }
 0x5b4   :  { %1828 = vmatprep.mubr.msk.bf16.mxu0 %vm58_vm0, %v1417_v52  ;;  %v1416_v0 = vadd.f32 %v2328_v62, %v1412_v50  ;;  %1847 = vmatpush3.bf16.msra.mxu1 %v1903_v59 }
 0x5b6   :  { %v1418_v4 = vpack.c.bf16 %v1416_v0, %v1415_v36 }
 0x5b8   :  { %1829 = vmatmul.mubr.msk.bf16.vlgmr.msra.gmra.mrb[20].mxu0 %vm58_vm0, %v1418_v4 }
 0x68b   :  { %v1830_v62 = vpop.f32.mrb[20].mxu0 }
 0x68c   :  { %v1491_v1 = vadd.f32 %v1830_v62, %v1682_v60  ;;  %v1482_v7 = vpop.f32.mrb[21].mxu0 }
 0x68d   :  { %v1483_v17 = vadd.f32 %v1682_v60, %v1482_v7  ;;  %v1831_v2 = vpop.f32.mrb[22].mxu0 }
 0x68e   :  { %v1494_v56 = vadd.f32 %v1831_v2, %v1682_v60  ;;  %v1485_v11 = vpop.f32.mrb[23].mxu0  ;;  %v1499_v8 = vmax.f32 %v1491_v1, 0.0 }
 0x68f   :  { %v1486_v12 = vadd.f32 %v1682_v60, %v1485_v11  ;;  %v1497_v13 = vmax.f32 %v1483_v17, 0.0 }
 0x690   :  { %v1500_v5 = vmax.f32 %v1494_v56, 0.0 }
 0x691   :  { %v1498_v10 = vmax.f32 %v1486_v12, 0.0 }
 0x692   :  { %v1502_v15 = vpack.c.bf16 %v1500_v5, %v1499_v8 }
 0x693   :  { %v1501_v3 = vpack.c.bf16 %v1498_v10, %v1497_v13 }
 0x695   :  { %1848 = vmatprep.mubr.bf16.mxu1 %v1501_v3 }
 0x696   :  { %1849 = vmatmul.mubr.bf16.vlgmr.msra.gmra.mrb[16].mxu1 %v1502_v15 }
 0x769   :  { %v1850_v6 = vpop.f32.mrb[16].mxu1 }
 0x76a   :  { %v1617_v16 = vadd.f32 %v1850_v6, %v1687_v45  ;;  %v1608_v18 = vpop.f32.mrb[17].mxu1 }
 0x76b   :  { %v1609_v46 = vadd.f32 %v1687_v45, %v1608_v18  ;;  %v1851_v55 = vpop.f32.mrb[18].mxu1 }
 0x76c   :  { %v1625_v19 = vadd.f32 %v1617_v16, %v2563_v54  ;;  %v1620_v21 = vadd.f32 %v1851_v55, %v1687_v45  ;;  %v1611_v23 = vpop.f32.mrb[19].mxu1 }
 0x76d   :  { %v1623_v9 = vadd.f32 %v1609_v46, %v2553_v20  ;;  %v1612_v28 = vadd.f32 %v1687_v45, %v1611_v23 }
 0x76e   :  { %1629 = vst.msk [vmem:[#allocation7 + $0x10] sm:$0xff] %vm58_vm0, %v1625_v19  ;;  %v1626_v29 = vadd.f32 %v1620_v21, %v2568_v39 }
 0x76f   :  { %1627 = vst.msk [vmem:[#allocation7] sm:$0xff] %vm58_vm0, %v1623_v9  ;;  %v1624_v30 = vadd.f32 %v1612_v28, %v2558_v51 }
 0x770   :  { %1630 = vst.msk [vmem:[#allocation7 + $0x18] sm:$0xff] %vm58_vm0, %v1626_v29 }
 0x771   :  { %1628 = vst.msk [vmem:[#allocation7 + $0x8] sm:$0xff] %vm58_vm0, %v1624_v30 }
 0x772   :  { %2007 = shalt.err (!%p2004_p9)
}
 0x773   :  { %s2008_s15 = scalar_lea.hbm %s2655_s9, 512 }
 0x774   :  { %p2009_p10 = scmp.ne.s32.totalorder %s2655_s9, %s2008_s15  ;;  %p2012_p11 = scmp.lt.u32.totalorder %s2008_s15, %s2655_s9 }
 0x776   :  { %p2014_p12 = pnand %p2012_p11, %p2009_p10 }
 0x778   :  { %2017 = shalt.err (!%p2014_p12)
}
 0x779   :  { %s2026_s18 = smov 128   ;;  %s2027_s19 = smov 8  }
 0x77a   :  { %1642 = dma.vmem_to_hbm [thread:$0]  %s1637_s2, 512, %s2655_s9, [#allocation5], %s2026_s18, %s2026_s18, %s2027_s19  }
 0x77b   :  { %2020 = dma.done.wait [#allocation5], 512  }
 0x77c   :  { %2021 = vsyncadd [#allocation5], 4294966784 }
 0x77d   :  { %1646 = vsyncpa [#allocation5], 1 }
 0x77e   :  { %1647 = vsyncpa [#allocation6], 1 }

</bundles_post_ra>
